<compile_context>
chip_gen: v6e
topology: v6e:2x2x1
jax: 0.10.0
libtpu: 0.0.40
codegen_flags: <defaults>
</compile_context>

<pallas_src>
import functools
import math

import jax
import jax.numpy as jnp
from jax.experimental import pallas as pl
from jax.experimental.pallas import tpu as pltpu


# ----------------------------------------------------------------------------
# helpers
# ----------------------------------------------------------------------------
def _pick_tile(dim, target, base):
    """Largest multiple of `base` that divides `dim` and is <= target,
    otherwise the full dim (full-extent blocks are always legal)."""
    if dim <= target:
        return dim
    t = (target // base) * base
    while t >= base:
        if dim % t == 0:
            return t
        t -= base
    return dim


# ----------------------------------------------------------------------------
# Tiled linear (x @ W + b, optional fused tanh-GELU)
# ----------------------------------------------------------------------------
def _linear_accum(x_ref, w_ref, o_ref, acc_ref, b_ref, activation):
    k = pl.program_id(2)

    @pl.when(k == 0)
    def _init():
        acc_ref[...] = jnp.zeros_like(acc_ref)

    acc_ref[...] += jnp.dot(
        x_ref[...].astype(jnp.bfloat16),
        w_ref[...].astype(jnp.bfloat16),
        preferred_element_type=jnp.float32,
    )

    @pl.when(k == pl.num_programs(2) - 1)
    def _finalize():
        y = acc_ref[...]
        if b_ref is not None:
            y = y + b_ref[...].astype(jnp.float32)
        if activation == "gelu_tanh":
            c = math.sqrt(2.0 / math.pi)
            y = 0.5 * y * (1.0 + jnp.tanh(c * (y + 0.044715 * y * y * y)))
        o_ref[...] = y.astype(o_ref.dtype)


def _linear_bias_kernel(x_ref, w_ref, b_ref, o_ref, acc_ref, *, activation):
    _linear_accum(x_ref, w_ref, o_ref, acc_ref, b_ref, activation)


def _linear_nobias_kernel(x_ref, w_ref, o_ref, acc_ref, *, activation):
    _linear_accum(x_ref, w_ref, o_ref, acc_ref, None, activation)


def linear(x2d, w, b=None, activation=None, out_dtype=jnp.float32,
           tm=512, tn=512, tk=512):
    """x2d: (M, K), w: (K, N) [stored bf16], b: (N,) f32 or None."""
    M, K = x2d.shape
    K2, N = w.shape
    assert K == K2
    tm = _pick_tile(M, tm, 8)
    tn = _pick_tile(N, tn, 128)
    tk = _pick_tile(K, tk, 128)
    grid = (M // tm, N // tn, K // tk)

    in_specs = [
        pl.BlockSpec((tm, tk), lambda i, j, k: (i, k)),
        pl.BlockSpec((tk, tn), lambda i, j, k: (k, j)),
    ]
    args = [x2d, w]
    if b is not None:
        in_specs.append(pl.BlockSpec((1, tn), lambda i, j, k: (0, j)))
        args.append(b.reshape(1, N))
        kernel = functools.partial(_linear_bias_kernel, activation=activation)
    else:
        kernel = functools.partial(_linear_nobias_kernel, activation=activation)

    return pl.pallas_call(
        kernel,
        out_shape=jax.ShapeDtypeStruct((M, N), out_dtype),
        grid=grid,
        in_specs=in_specs,
        out_specs=pl.BlockSpec((tm, tn), lambda i, j, k: (i, j)),
        scratch_shapes=[pltpu.VMEM((tm, tn), jnp.float32)],
        compiler_params=pltpu.CompilerParams(
            dimension_semantics=("parallel", "parallel", "arbitrary")),
    )(*args)


# ----------------------------------------------------------------------------
# Row-tiled LayerNorm (matches torch: biased variance, eps=1e-5)
# ----------------------------------------------------------------------------
def _layernorm_kernel(x_ref, g_ref, b_ref, o_ref, *, eps):
    x = x_ref[...].astype(jnp.float32)
    mean = jnp.mean(x, axis=-1, keepdims=True)
    xc = x - mean
    var = jnp.mean(xc * xc, axis=-1, keepdims=True)
    y = xc * jax.lax.rsqrt(var + eps)
    y = y * g_ref[...].astype(jnp.float32) + b_ref[...].astype(jnp.float32)
    o_ref[...] = y.astype(o_ref.dtype)


def layernorm(x2d, gamma, beta, out_dtype=jnp.float32, tm=256):
    M, C = x2d.shape
    tm = _pick_tile(M, tm, 8)
    return pl.pallas_call(
        functools.partial(_layernorm_kernel, eps=1e-5),
        out_shape=jax.ShapeDtypeStruct((M, C), out_dtype),
        grid=(M // tm,),
        in_specs=[
            pl.BlockSpec((tm, C), lambda i: (i, 0)),
            pl.BlockSpec((1, C), lambda i: (0, 0)),
            pl.BlockSpec((1, C), lambda i: (0, 0)),
        ],
        out_specs=pl.BlockSpec((tm, C), lambda i: (i, 0)),
        compiler_params=pltpu.CompilerParams(dimension_semantics=("parallel",)),
    )(x2d, gamma.reshape(1, C), beta.reshape(1, C))


# ----------------------------------------------------------------------------
# Flash-style causal attention (online softmax, causal tile skipping)
# ----------------------------------------------------------------------------
def _flash_attn_kernel(q_ref, k_ref, v_ref, o_ref, m_ref, l_ref, acc_ref, *,
                       scale, block_q, block_k):
    qi = pl.program_id(1)
    ki = pl.program_id(2)

    @pl.when(ki == 0)
    def _init():
        m_ref[...] = jnp.full_like(m_ref, -1e30)
        l_ref[...] = jnp.zeros_like(l_ref)
        acc_ref[...] = jnp.zeros_like(acc_ref)

    q_start = qi * block_q
    k_start = ki * block_k

    # Skip kv tiles that are entirely above the causal diagonal.
    @pl.when(k_start < q_start + block_q)
    def _compute():
        q = q_ref[0].astype(jnp.bfloat16)   # (H, bq, hd)
        k = k_ref[0].astype(jnp.bfloat16)   # (H, bk, hd)
        v = v_ref[0].astype(jnp.bfloat16)   # (H, bk, hd)

        # batched Q@K^T without materializing a transpose of K
        s = jnp.einsum("hqd,hkd->hqk", q, k,
                       preferred_element_type=jnp.float32) * scale  # (H,bq,bk)

        row = q_start + jax.lax.broadcasted_iota(jnp.int32, (block_q, block_k), 0)
        col = k_start + jax.lax.broadcasted_iota(jnp.int32, (block_q, block_k), 1)
        s = jnp.where((col <= row)[None, :, :], s, -1e30)

        m_prev = m_ref[...]                                   # (H, bq, 1)
        m_new = jnp.maximum(m_prev, jnp.max(s, axis=-1, keepdims=True))
        alpha = jnp.exp(m_prev - m_new)
        p = jnp.exp(s - m_new)                                # (H, bq, bk)
        l_ref[...] = alpha * l_ref[...] + jnp.sum(p, axis=-1, keepdims=True)
        acc_ref[...] = alpha * acc_ref[...] + jnp.einsum(
            "hqk,hkd->hqd", p.astype(jnp.bfloat16), v,
            preferred_element_type=jnp.float32)               # (H, bq, hd)
        m_ref[...] = m_new

    @pl.when(ki == pl.num_programs(2) - 1)
    def _finalize():
        inv_l = pl.reciprocal(l_ref[...], approx=True)
        o_ref[0] = (acc_ref[...] * inv_l).astype(o_ref.dtype)


def causal_attention(q, k, v, block_q=128):
    """q, k, v: (B, H, T, hd) -> (B, H, T, hd)."""
    B, H, T, hd = q.shape
    bq = _pick_tile(T, block_q, 8)
    bk = bq  # equal q/kv tiles: computed tiles never contain fully-masked rows
    scale = 1.0 / math.sqrt(hd)
    kernel = functools.partial(_flash_attn_kernel, scale=scale,
                               block_q=bq, block_k=bk)
    q_spec = pl.BlockSpec((1, H, bq, hd), lambda b, qi, ki: (b, 0, qi, 0))
    kv_spec = pl.BlockSpec((1, H, bk, hd), lambda b, qi, ki: (b, 0, ki, 0))
    o_spec = pl.BlockSpec((1, H, bq, hd), lambda b, qi, ki: (b, 0, qi, 0))
    return pl.pallas_call(
        kernel,
        out_shape=jax.ShapeDtypeStruct((B, H, T, hd), q.dtype),
        grid=(B, T // bq, T // bk),
        in_specs=[q_spec, kv_spec, kv_spec],
        out_specs=o_spec,
        scratch_shapes=[
            pltpu.VMEM((H, bq, 1), jnp.float32),   # running max
            pltpu.VMEM((H, bq, 1), jnp.float32),   # running sum
            pltpu.VMEM((H, bq, hd), jnp.float32),  # output accumulator
        ],
        compiler_params=pltpu.CompilerParams(
            dimension_semantics=("parallel", "parallel", "arbitrary")),
    )(q, k, v)


# ----------------------------------------------------------------------------
# Parameter initialization (mirrors GPT._init_weights; matmul weights in bf16)
# ----------------------------------------------------------------------------
def init_params(key, cfg):
    V, C, L, BS = cfg["vocab_size"], cfg["n_emb"], cfg["n_layer"], cfg["block_size"]
    std = 0.02
    proj_std = 0.02 * (2 * L) ** -0.5  # NANOGPT_SCALE_INIT

    def nrm(k, shape, s, dtype=jnp.float32):
        return (s * jax.random.normal(k, shape, dtype=jnp.float32)).astype(dtype)

    keys = jax.random.split(key, 3 + 4 * L)
    params = {
        "wte": nrm(keys[0], (V, C), std),
        "wpe": nrm(keys[1], (BS, C), std),
        "lnf_g": jnp.ones((C,), jnp.float32),
        "lnf_b": jnp.zeros((C,), jnp.float32),
        "lm_head_w": nrm(keys[2], (C, V), std, jnp.bfloat16),  # (in, out), no bias
        "blocks": [],
    }
    for l in range(L):
        k0, k1, k2, k3 = keys[3 + 4 * l: 3 + 4 * l + 4]
        params["blocks"].append({
            "ln1_g": jnp.ones((C,), jnp.float32),
            "ln1_b": jnp.zeros((C,), jnp.float32),
            "attn_w": nrm(k0, (C, 3 * C), std, jnp.bfloat16),
            "attn_b": jnp.zeros((3 * C,), jnp.float32),
            "attn_proj_w": nrm(k1, (C, C), proj_std, jnp.bfloat16),
            "attn_proj_b": jnp.zeros((C,), jnp.float32),
            "ln2_g": jnp.ones((C,), jnp.float32),
            "ln2_b": jnp.zeros((C,), jnp.float32),
            "fc_w": nrm(k2, (C, 4 * C), std, jnp.bfloat16),
            "fc_b": jnp.zeros((4 * C,), jnp.float32),
            "mlp_proj_w": nrm(k3, (4 * C, C), proj_std, jnp.bfloat16),
            "mlp_proj_b": jnp.zeros((C,), jnp.float32),
        })
    return params


# ----------------------------------------------------------------------------
# Forward pass (embedding gather / residual adds / reshapes are XLA glue)
# ----------------------------------------------------------------------------
def gpt_forward(params, idx, cfg):
    B, T = idx.shape
    C, H = cfg["n_emb"], cfg["n_head"]
    hd = C // H
    assert T <= cfg["block_size"]

    tok_emb = params["wte"][idx]                 # (B, T, C) gather (glue)
    pos_emb = params["wpe"][:T]                  # (T, C)
    x2d = (tok_emb + pos_emb[None, :, :]).astype(jnp.float32).reshape(B * T, C)

    for lp in params["blocks"]:
        # --- attention sub-block ---
        h = layernorm(x2d, lp["ln1_g"], lp["ln1_b"], out_dtype=jnp.bfloat16)
        qkv = linear(h, lp["attn_w"], lp["attn_b"], out_dtype=jnp.bfloat16)
        qkv = qkv.reshape(B, T, 3 * C)
        q, k, v = jnp.split(qkv, 3, axis=2)
        q = q.reshape(B, T, H, hd).transpose(0, 2, 1, 3)
        k = k.reshape(B, T, H, hd).transpose(0, 2, 1, 3)
        v = v.reshape(B, T, H, hd).transpose(0, 2, 1, 3)
        y = causal_attention(q, k, v)            # (B, H, T, hd) bf16
        y = y.transpose(0, 2, 1, 3).reshape(B * T, C)
        y = linear(y, lp["attn_proj_w"], lp["attn_proj_b"], out_dtype=jnp.float32)
        x2d = x2d + y

        # --- MLP sub-block ---
        h = layernorm(x2d, lp["ln2_g"], lp["ln2_b"], out_dtype=jnp.bfloat16)
        h = linear(h, lp["fc_w"], lp["fc_b"], activation="gelu_tanh",
                   out_dtype=jnp.bfloat16)
        h = linear(h, lp["mlp_proj_w"], lp["mlp_proj_b"], out_dtype=jnp.float32)
        x2d = x2d + h

    h = layernorm(x2d, params["lnf_g"], params["lnf_b"], out_dtype=jnp.bfloat16)
    logits = linear(h, params["lm_head_w"], None, out_dtype=jnp.float32)
    return logits.reshape(B, T, cfg["vocab_size"])
    # TODO(synk): targets/cross-entropy loss path omitted (forward called with targets=None)


# ----------------------------------------------------------------------------
if __name__ == "__main__":
    cfg = dict(block_size=16, vocab_size=64, n_layer=2, n_head=2, n_emb=32)
    B, T = 2, 8

    key = jax.random.PRNGKey(0)
    kp, kidx = jax.random.split(key)
    params = init_params(kp, cfg)
    idx = jax.random.randint(kidx, (B, T), 0, cfg["vocab_size"], dtype=jnp.int32)

    fwd = jax.jit(functools.partial(gpt_forward, cfg=cfg))
    logits = fwd(params, idx)
    logits = jax.block_until_ready(logits)
    assert logits.shape == (B, T, cfg["vocab_size"])
    assert bool(jnp.all(jnp.isfinite(logits)))
    print("KERNEL_OK")
</pallas_src>

<mosaic_0001>
module attributes {stable_mosaic.version = 11 : i64} {
  func.func @_layernorm_kernel(%arg0: i32, %arg1: memref<16x32xf32, #tpu.memory_space<vmem>>, %arg2: memref<1x32xf32, #tpu.memory_space<vmem>>, %arg3: memref<1x32xf32, #tpu.memory_space<vmem>>, %arg4: memref<16x32xbf16, #tpu.memory_space<vmem>>) attributes {dimension_semantics = [#tpu.dimension_semantics<parallel>], iteration_bounds = array<i64: 1>, scalar_prefetch = 0 : i64, scratch_operands = 0 : i64, tpu.core_type = #tpu.core_type<tc>, window_params = [{transform_indices = @transform_0, window_bounds = array<i64: 16, 32>}, {pipeline_mode = #tpu.pipeline_mode<synchronous>, transform_indices = @transform_1, window_bounds = array<i64: 1, 32>}, {pipeline_mode = #tpu.pipeline_mode<synchronous>, transform_indices = @transform_2, window_bounds = array<i64: 1, 32>}, {transform_indices = @transform_3, window_bounds = array<i64: 16, 32>}]} {
    %c0 = arith.constant 0 : index
    %c0_0 = arith.constant 0 : index
    %0 = vector.load %arg1[%c0, %c0_0] : memref<16x32xf32, #tpu.memory_space<vmem>>, vector<16x32xf32>
    %cst = arith.constant dense<0.000000e+00> : vector<16xf32>
    %1 = vector.multi_reduction <add>, %0, %cst [1] : vector<16x32xf32> to vector<16xf32>
    %2 = vector.shape_cast %1 : vector<16xf32> to vector<16x1xf32>
    %cst_1 = arith.constant 3.200000e+01 : f32
    %3 = vector.broadcast %cst_1 : f32 to vector<16x1xf32>
    %4 = arith.divf %2, %3 : vector<16x1xf32>
    %5 = vector.broadcast %4 : vector<16x1xf32> to vector<16x32xf32>
    %6 = arith.subf %0, %5 : vector<16x32xf32>
    %7 = arith.mulf %6, %6 : vector<16x32xf32>
    %cst_2 = arith.constant dense<0.000000e+00> : vector<16xf32>
    %8 = vector.multi_reduction <add>, %7, %cst_2 [1] : vector<16x32xf32> to vector<16xf32>
    %9 = vector.shape_cast %8 : vector<16xf32> to vector<16x1xf32>
    %cst_3 = arith.constant 3.200000e+01 : f32
    %10 = vector.broadcast %cst_3 : f32 to vector<16x1xf32>
    %11 = arith.divf %9, %10 : vector<16x1xf32>
    %cst_4 = arith.constant 9.99999974E-6 : f32
    %12 = vector.broadcast %cst_4 : f32 to vector<16x1xf32>
    %13 = arith.addf %11, %12 : vector<16x1xf32>
    %14 = math.rsqrt %13 : vector<16x1xf32>
    %15 = vector.broadcast %14 : vector<16x1xf32> to vector<16x32xf32>
    %16 = arith.mulf %6, %15 : vector<16x32xf32>
    %c0_5 = arith.constant 0 : index
    %c0_6 = arith.constant 0 : index
    %17 = vector.load %arg2[%c0_5, %c0_6] : memref<1x32xf32, #tpu.memory_space<vmem>>, vector<1x32xf32>
    %18 = vector.broadcast %17 : vector<1x32xf32> to vector<16x32xf32>
    %19 = arith.mulf %16, %18 : vector<16x32xf32>
    %c0_7 = arith.constant 0 : index
    %c0_8 = arith.constant 0 : index
    %20 = vector.load %arg3[%c0_7, %c0_8] : memref<1x32xf32, #tpu.memory_space<vmem>>, vector<1x32xf32>
    %21 = vector.broadcast %20 : vector<1x32xf32> to vector<16x32xf32>
    %22 = arith.addf %19, %21 : vector<16x32xf32>
    %23 = arith.truncf %22 : vector<16x32xf32> to vector<16x32xbf16>
    %c0_9 = arith.constant 0 : index
    %c0_10 = arith.constant 0 : index
    %24 = vector.load %arg4[%c0_9, %c0_10] : memref<16x32xbf16, #tpu.memory_space<vmem>>, vector<16x32xbf16>
    tpu.vector_store %arg4[%c0_9, %c0_10], %23 {strides = array<i32>} : memref<16x32xbf16, #tpu.memory_space<vmem>>, vector<16x32xbf16>,
    return
  }
  func.func @transform_0(%arg0: i32) -> (i32, i32) {
    %c0_i32 = arith.constant 0 : i32
    %c0_i32_0 = arith.constant 0 : i32
    return %arg0, %c0_i32 : i32, i32
  }
  func.func @transform_1(%arg0: i32) -> (i32, i32) {
    %c0_i32 = arith.constant 0 : i32
    %c0_i32_0 = arith.constant 0 : i32
    %c0_i32_1 = arith.constant 0 : i32
    return %c0_i32, %c0_i32_0 : i32, i32
  }
  func.func @transform_2(%arg0: i32) -> (i32, i32) {
    %c0_i32 = arith.constant 0 : i32
    %c0_i32_0 = arith.constant 0 : i32
    %c0_i32_1 = arith.constant 0 : i32
    return %c0_i32, %c0_i32_0 : i32, i32
  }
  func.func @transform_3(%arg0: i32) -> (i32, i32) {
    %c0_i32 = arith.constant 0 : i32
    %c0_i32_0 = arith.constant 0 : i32
    return %arg0, %c0_i32 : i32, i32
  }
}

module attributes {stable_mosaic.version = 11 : i64} {
  func.func @_linear_bias_kernel(%arg0: i32, %arg1: i32, %arg2: i32, %arg3: memref<16x32xbf16, #tpu.memory_space<vmem>>, %arg4: memref<32x96xbf16, #tpu.memory_space<vmem>>, %arg5: memref<1x96xf32, #tpu.memory_space<vmem>>, %arg6: memref<16x96xbf16, #tpu.memory_space<vmem>>, %arg7: memref<16x96xf32, #tpu.memory_space<vmem>>) attributes {dimension_semantics = [#tpu.dimension_semantics<parallel>, #tpu.dimension_semantics<parallel>, #tpu.dimension_semantics<arbitrary>], iteration_bounds = array<i64: 1, 1, 1>, scalar_prefetch = 0 : i64, scratch_operands = 1 : i64, tpu.core_type = #tpu.core_type<tc>, window_params = [{transform_indices = @transform_0, window_bounds = array<i64: 16, 32>}, {transform_indices = @transform_1, window_bounds = array<i64: 32, 96>}, {transform_indices = @transform_2, window_bounds = array<i64: 1, 96>}, {transform_indices = @transform_3, window_bounds = array<i64: 16, 96>}]} {
    %c0_i32 = arith.constant 0 : i32
    %0 = arith.cmpi eq, %arg2, %c0_i32 : i32
    %1 = arith.extui %0 : i1 to i32
    %c0_i32_0 = arith.constant 0 : i32
    %2 = arith.cmpi ne, %1, %c0_i32_0 : i32
    scf.if %2 {
      %cst_10 = arith.constant 0.000000e+00 : f32
      %12 = vector.broadcast %cst_10 : f32 to vector<16x96xf32>
      %c0_11 = arith.constant 0 : index
      %c0_12 = arith.constant 0 : index
      %13 = vector.load %arg7[%c0_11, %c0_12] : memref<16x96xf32, #tpu.memory_space<vmem>>, vector<16x96xf32>
      tpu.vector_store %arg7[%c0_11, %c0_12], %12 {strides = array<i32>} : memref<16x96xf32, #tpu.memory_space<vmem>>, vector<16x96xf32>,
    } else {
    }
    %c0 = arith.constant 0 : index
    %c0_1 = arith.constant 0 : index
    %3 = vector.load %arg7[%c0, %c0_1] : memref<16x96xf32, #tpu.memory_space<vmem>>, vector<16x96xf32>
    %c0_2 = arith.constant 0 : index
    %c0_3 = arith.constant 0 : index
    %4 = vector.load %arg3[%c0_2, %c0_3] : memref<16x32xbf16, #tpu.memory_space<vmem>>, vector<16x32xbf16>
    %c0_4 = arith.constant 0 : index
    %c0_5 = arith.constant 0 : index
    %5 = vector.load %arg4[%c0_4, %c0_5] : memref<32x96xbf16, #tpu.memory_space<vmem>>, vector<32x96xbf16>
    %cst = arith.constant dense<0.000000e+00> : vector<16x96xf32>
    %6 = tpu.matmul %4, %5, %cst {dimension_numbers = #tpu.dot_dimension_numbers<[1], [0], [0], [1], [0, 0, 1, 1], [], []>} : vector<16x32xbf16>, vector<32x96xbf16>, vector<16x96xf32> -> vector<16x96xf32>
    %7 = arith.addf %3, %6 : vector<16x96xf32>
    %c0_6 = arith.constant 0 : index
    %c0_7 = arith.constant 0 : index
    %8 = vector.load %arg7[%c0_6, %c0_7] : memref<16x96xf32, #tpu.memory_space<vmem>>, vector<16x96xf32>
    tpu.vector_store %arg7[%c0_6, %c0_7], %7 {strides = array<i32>} : memref<16x96xf32, #tpu.memory_space<vmem>>, vector<16x96xf32>,
    %c0_i32_8 = arith.constant 0 : i32
    %9 = arith.cmpi eq, %arg2, %c0_i32_8 : i32
    %10 = arith.extui %9 : i1 to i32
    %c0_i32_9 = arith.constant 0 : i32
    %11 = arith.cmpi ne, %10, %c0_i32_9 : i32
    scf.if %11 {
      %c0_10 = arith.constant 0 : index
      %c0_11 = arith.constant 0 : index
      %12 = vector.load %arg7[%c0_10, %c0_11] : memref<16x96xf32, #tpu.memory_space<vmem>>, vector<16x96xf32>
      %c0_12 = arith.constant 0 : index
      %c0_13 = arith.constant 0 : index
      %13 = vector.load %arg5[%c0_12, %c0_13] : memref<1x96xf32, #tpu.memory_space<vmem>>, vector<1x96xf32>
      %14 = vector.broadcast %13 : vector<1x96xf32> to vector<16x96xf32>
      %15 = arith.addf %12, %14 : vector<16x96xf32>
      %16 = arith.truncf %15 : vector<16x96xf32> to vector<16x96xbf16>
      %c0_14 = arith.constant 0 : index
      %c0_15 = arith.constant 0 : index
      %17 = vector.load %arg6[%c0_14, %c0_15] : memref<16x96xbf16, #tpu.memory_space<vmem>>, vector<16x96xbf16>
      tpu.vector_store %arg6[%c0_14, %c0_15], %16 {strides = array<i32>} : memref<16x96xbf16, #tpu.memory_space<vmem>>, vector<16x96xbf16>,
    } else {
    }
    return
  }
  func.func @transform_0(%arg0: i32, %arg1: i32, %arg2: i32) -> (i32, i32) {
    %c0_i32 = arith.constant 0 : i32
    return %arg0, %arg2 : i32, i32
  }
  func.func @transform_1(%arg0: i32, %arg1: i32, %arg2: i32) -> (i32, i32) {
    %c0_i32 = arith.constant 0 : i32
    return %arg2, %arg1 : i32, i32
  }
  func.func @transform_2(%arg0: i32, %arg1: i32, %arg2: i32) -> (i32, i32) {
    %c0_i32 = arith.constant 0 : i32
    %c0_i32_0 = arith.constant 0 : i32
    return %c0_i32, %arg1 : i32, i32
  }
  func.func @transform_3(%arg0: i32, %arg1: i32, %arg2: i32) -> (i32, i32) {
    %c0_i32 = arith.constant 0 : i32
    return %arg0, %arg1 : i32, i32
  }
}

module attributes {stable_mosaic.version = 11 : i64} {
  func.func @_flash_attn_kernel(%arg0: i32, %arg1: i32, %arg2: i32, %arg3: memref<1x2x8x16xbf16, #tpu.memory_space<vmem>>, %arg4: memref<1x2x8x16xbf16, #tpu.memory_space<vmem>>, %arg5: memref<1x2x8x16xbf16, #tpu.memory_space<vmem>>, %arg6: memref<1x2x8x16xbf16, #tpu.memory_space<vmem>>, %arg7: memref<2x8x1xf32, #tpu.memory_space<vmem>>, %arg8: memref<2x8x1xf32, #tpu.memory_space<vmem>>, %arg9: memref<2x8x16xf32, #tpu.memory_space<vmem>>) attributes {dimension_semantics = [#tpu.dimension_semantics<parallel>, #tpu.dimension_semantics<parallel>, #tpu.dimension_semantics<arbitrary>], iteration_bounds = array<i64: 2, 1, 1>, scalar_prefetch = 0 : i64, scratch_operands = 3 : i64, tpu.core_type = #tpu.core_type<tc>, window_params = [{transform_indices = @transform_0, window_bounds = array<i64: 1, 2, 8, 16>}, {transform_indices = @transform_1, window_bounds = array<i64: 1, 2, 8, 16>}, {transform_indices = @transform_2, window_bounds = array<i64: 1, 2, 8, 16>}, {transform_indices = @transform_3, window_bounds = array<i64: 1, 2, 8, 16>}]} {
    %c0_i32 = arith.constant 0 : i32
    %0 = arith.cmpi eq, %arg2, %c0_i32 : i32
    %1 = arith.extui %0 : i1 to i32
    %c0_i32_0 = arith.constant 0 : i32
    %2 = arith.cmpi ne, %1, %c0_i32_0 : i32
    scf.if %2 {
      %cst = arith.constant -1.000000e+30 : f32
      %12 = vector.broadcast %cst : f32 to vector<2x8x1xf32>
      %c0 = arith.constant 0 : index
      %c0_6 = arith.constant 0 : index
      %c0_7 = arith.constant 0 : index
      %13 = vector.load %arg7[%c0, %c0_6, %c0_7] : memref<2x8x1xf32, #tpu.memory_space<vmem>>, vector<2x8x1xf32>
      tpu.vector_store %arg7[%c0, %c0_6, %c0_7], %12 {strides = array<i32>} : memref<2x8x1xf32, #tpu.memory_space<vmem>>, vector<2x8x1xf32>,
      %cst_8 = arith.constant 0.000000e+00 : f32
      %14 = vector.broadcast %cst_8 : f32 to vector<2x8x1xf32>
      %c0_9 = arith.constant 0 : index
      %c0_10 = arith.constant 0 : index
      %c0_11 = arith.constant 0 : index
      %15 = vector.load %arg8[%c0_9, %c0_10, %c0_11] : memref<2x8x1xf32, #tpu.memory_space<vmem>>, vector<2x8x1xf32>
      tpu.vector_store %arg8[%c0_9, %c0_10, %c0_11], %14 {strides = array<i32>} : memref<2x8x1xf32, #tpu.memory_space<vmem>>, vector<2x8x1xf32>,
      %cst_12 = arith.constant 0.000000e+00 : f32
      %16 = vector.broadcast %cst_12 : f32 to vector<2x8x16xf32>
      %c0_13 = arith.constant 0 : index
      %c0_14 = arith.constant 0 : index
      %c0_15 = arith.constant 0 : index
      %17 = vector.load %arg9[%c0_13, %c0_14, %c0_15] : memref<2x8x16xf32, #tpu.memory_space<vmem>>, vector<2x8x16xf32>
      tpu.vector_store %arg9[%c0_13, %c0_14, %c0_15], %16 {strides = array<i32>} : memref<2x8x16xf32, #tpu.memory_space<vmem>>, vector<2x8x16xf32>,
    } else {
    }
    %c8_i32 = arith.constant 8 : i32
    %3 = arith.muli %arg1, %c8_i32 : i32
    %c8_i32_1 = arith.constant 8 : i32
    %4 = arith.muli %arg2, %c8_i32_1 : i32
    %c8_i32_2 = arith.constant 8 : i32
    %5 = arith.addi %3, %c8_i32_2 : i32
    %6 = arith.cmpi slt, %4, %5 : i32
    %7 = arith.extui %6 : i1 to i32
    %c0_i32_3 = arith.constant 0 : i32
    %8 = arith.cmpi ne, %7, %c0_i32_3 : i32
    scf.if %8 {
      %c0 = arith.constant 0 : index
      %c0_6 = arith.constant 0 : index
      %c0_7 = arith.constant 0 : index
      %c0_8 = arith.constant 0 : index
      %12 = vector.load %arg3[%c0, %c0_6, %c0_7, %c0_8] : memref<1x2x8x16xbf16, #tpu.memory_space<vmem>>, vector<1x2x8x16xbf16>
      %13 = vector.shape_cast %12 : vector<1x2x8x16xbf16> to vector<2x8x16xbf16>
      %c0_9 = arith.constant 0 : index
      %c0_10 = arith.constant 0 : index
      %c0_11 = arith.constant 0 : index
      %c0_12 = arith.constant 0 : index
      %14 = vector.load %arg4[%c0_9, %c0_10, %c0_11, %c0_12] : memref<1x2x8x16xbf16, #tpu.memory_space<vmem>>, vector<1x2x8x16xbf16>
      %15 = vector.shape_cast %14 : vector<1x2x8x16xbf16> to vector<2x8x16xbf16>
      %c0_13 = arith.constant 0 : index
      %c0_14 = arith.constant 0 : index
      %c0_15 = arith.constant 0 : index
      %c0_16 = arith.constant 0 : index
      %16 = vector.load %arg5[%c0_13, %c0_14, %c0_15, %c0_16] : memref<1x2x8x16xbf16, #tpu.memory_space<vmem>>, vector<1x2x8x16xbf16>
      %17 = vector.shape_cast %16 : vector<1x2x8x16xbf16> to vector<2x8x16xbf16>
      "tpu.trace_start"() <{level = 10 : i32, message = "hqd,hkd->hqk"}> : () -> ()
      %cst = arith.constant dense<0.000000e+00> : vector<2x8x8xf32>
      %18 = tpu.matmul %13, %15, %cst {dimension_numbers = #tpu.dot_dimension_numbers<[2], [2], [1], [1], [0, 0, 0, 1, 1, 1], [0], [0]>} : vector<2x8x16xbf16>, vector<2x8x16xbf16>, vector<2x8x8xf32> -> vector<2x8x8xf32>
      "tpu.trace_stop"() : () -> ()
      %cst_17 = arith.constant 2.500000e-01 : f32
      %19 = vector.broadcast %cst_17 : f32 to vector<2x8x8xf32>
      %20 = arith.mulf %18, %19 : vector<2x8x8xf32>
      %21 = tpu.iota {dimensions = array<i32: 0>} : vector<8x8xi32>
      %22 = vector.broadcast %3 : i32 to vector<8x8xi32>
      %23 = arith.addi %22, %21 : vector<8x8xi32>
      %24 = tpu.iota {dimensions = array<i32: 1>} : vector<8x8xi32>
      %25 = vector.broadcast %4 : i32 to vector<8x8xi32>
      %26 = arith.addi %25, %24 : vector<8x8xi32>
      %27 = arith.cmpi sle, %26, %23 : vector<8x8xi32>
      %28 = vector.shape_cast %27 : vector<8x8xi1> to vector<1x8x8xi1>
      %cst_18 = arith.constant -1.000000e+30 : f32
      %29 = vector.shape_cast %28 : vector<1x8x8xi1> to vector<1x8x8xi1>
      %30 = vector.broadcast %29 : vector<1x8x8xi1> to vector<2x8x8xi1>
      %31 = vector.broadcast %cst_18 : f32 to vector<2x8x8xf32>
      %32 = arith.select %30, %20, %31 : vector<2x8x8xi1>, vector<2x8x8xf32>
      %c0_19 = arith.constant 0 : index
      %c0_20 = arith.constant 0 : index
      %c0_21 = arith.constant 0 : index
      %33 = vector.load %arg7[%c0_19, %c0_20, %c0_21] : memref<2x8x1xf32, #tpu.memory_space<vmem>>, vector<2x8x1xf32>
      %cst_22 = arith.constant dense<0xFF800000> : vector<2x8xf32>
      %34 = vector.multi_reduction <maximumf>, %32, %cst_22 [2] : vector<2x8x8xf32> to vector<2x8xf32>
      %35 = vector.shape_cast %34 : vector<2x8xf32> to vector<2x8x1xf32>
      %36 = arith.maximumf %33, %35 : vector<2x8x1xf32>
      %37 = arith.subf %33, %36 : vector<2x8x1xf32>
      %38 = math.exp %37 : vector<2x8x1xf32>
      %39 = vector.broadcast %36 : vector<2x8x1xf32> to vector<2x8x8xf32>
      %40 = arith.subf %32, %39 : vector<2x8x8xf32>
      %41 = math.exp %40 : vector<2x8x8xf32>
      %c0_23 = arith.constant 0 : index
      %c0_24 = arith.constant 0 : index
      %c0_25 = arith.constant 0 : index
      %42 = vector.load %arg8[%c0_23, %c0_24, %c0_25] : memref<2x8x1xf32, #tpu.memory_space<vmem>>, vector<2x8x1xf32>
      %43 = arith.mulf %38, %42 : vector<2x8x1xf32>
      %cst_26 = arith.constant dense<0.000000e+00> : vector<2x8xf32>
      %44 = vector.multi_reduction <add>, %41, %cst_26 [2] : vector<2x8x8xf32> to vector<2x8xf32>
      %45 = vector.shape_cast %44 : vector<2x8xf32> to vector<2x8x1xf32>
      %46 = arith.addf %43, %45 : vector<2x8x1xf32>
      %c0_27 = arith.constant 0 : index
      %c0_28 = arith.constant 0 : index
      %c0_29 = arith.constant 0 : index
      %47 = vector.load %arg8[%c0_27, %c0_28, %c0_29] : memref<2x8x1xf32, #tpu.memory_space<vmem>>, vector<2x8x1xf32>
      tpu.vector_store %arg8[%c0_27, %c0_28, %c0_29], %46 {strides = array<i32>} : memref<2x8x1xf32, #tpu.memory_space<vmem>>, vector<2x8x1xf32>,
      %c0_30 = arith.constant 0 : index
      %c0_31 = arith.constant 0 : index
      %c0_32 = arith.constant 0 : index
      %48 = vector.load %arg9[%c0_30, %c0_31, %c0_32] : memref<2x8x16xf32, #tpu.memory_space<vmem>>, vector<2x8x16xf32>
      %49 = vector.broadcast %38 : vector<2x8x1xf32> to vector<2x8x16xf32>
      %50 = arith.mulf %49, %48 : vector<2x8x16xf32>
      %51 = arith.truncf %41 : vector<2x8x8xf32> to vector<2x8x8xbf16>
      "tpu.trace_start"() <{level = 10 : i32, message = "hqk,hkd->hqd"}> : () -> ()
      %cst_33 = arith.constant dense<0.000000e+00> : vector<2x8x16xf32>
      %52 = tpu.matmul %51, %17, %cst_33 {dimension_numbers = #tpu.dot_dimension_numbers<[2], [1], [1], [2], [0, 0, 0, 1, 1, 2], [0], [0]>} : vector<2x8x8xbf16>, vector<2x8x16xbf16>, vector<2x8x16xf32> -> vector<2x8x16xf32>
      "tpu.trace_stop"() : () -> ()
      %53 = arith.addf %50, %52 : vector<2x8x16xf32>
      %c0_34 = arith.constant 0 : index
      %c0_35 = arith.constant 0 : index
      %c0_36 = arith.constant 0 : index
      %54 = vector.load %arg9[%c0_34, %c0_35, %c0_36] : memref<2x8x16xf32, #tpu.memory_space<vmem>>, vector<2x8x16xf32>
      tpu.vector_store %arg9[%c0_34, %c0_35, %c0_36], %53 {strides = array<i32>} : memref<2x8x16xf32, #tpu.memory_space<vmem>>, vector<2x8x16xf32>,
      %c0_37 = arith.constant 0 : index
      %c0_38 = arith.constant 0 : index
      %c0_39 = arith.constant 0 : index
      %55 = vector.load %arg7[%c0_37, %c0_38, %c0_39] : memref<2x8x1xf32, #tpu.memory_space<vmem>>, vector<2x8x1xf32>
      tpu.vector_store %arg7[%c0_37, %c0_38, %c0_39], %36 {strides = array<i32>} : memref<2x8x1xf32, #tpu.memory_space<vmem>>, vector<2x8x1xf32>,
    } else {
    }
    %c0_i32_4 = arith.constant 0 : i32
    %9 = arith.cmpi eq, %arg2, %c0_i32_4 : i32
    %10 = arith.extui %9 : i1 to i32
    %c0_i32_5 = arith.constant 0 : i32
    %11 = arith.cmpi ne, %10, %c0_i32_5 : i32
    scf.if %11 {
      %c0 = arith.constant 0 : index
      %c0_6 = arith.constant 0 : index
      %c0_7 = arith.constant 0 : index
      %12 = vector.load %arg8[%c0, %c0_6, %c0_7] : memref<2x8x1xf32, #tpu.memory_space<vmem>>, vector<2x8x1xf32>
      %13 = tpu.reciprocal %12 {approx = true} : vector<2x8x1xf32> -> vector<2x8x1xf32>
      %c0_8 = arith.constant 0 : index
      %c0_9 = arith.constant 0 : index
      %c0_10 = arith.constant 0 : index
      %14 = vector.load %arg9[%c0_8, %c0_9, %c0_10] : memref<2x8x16xf32, #tpu.memory_space<vmem>>, vector<2x8x16xf32>
      %15 = vector.broadcast %13 : vector<2x8x1xf32> to vector<2x8x16xf32>
      %16 = arith.mulf %14, %15 : vector<2x8x16xf32>
      %17 = arith.truncf %16 : vector<2x8x16xf32> to vector<2x8x16xbf16>
      %c0_11 = arith.constant 0 : index
      %c0_12 = arith.constant 0 : index
      %c0_13 = arith.constant 0 : index
      %c0_14 = arith.constant 0 : index
      %18 = vector.load %arg6[%c0_11, %c0_12, %c0_13, %c0_14] : memref<1x2x8x16xbf16, #tpu.memory_space<vmem>>, vector<1x2x8x16xbf16>
      %19 = vector.shape_cast %18 : vector<1x2x8x16xbf16> to vector<2x8x16xbf16>
      %20 = vector.shape_cast %17 : vector<2x8x16xbf16> to vector<1x2x8x16xbf16>
      tpu.vector_store %arg6[%c0_11, %c0_12, %c0_13, %c0_14], %20 {strides = array<i32>} : memref<1x2x8x16xbf16, #tpu.memory_space<vmem>>, vector<1x2x8x16xbf16>,
    } else {
    }
    return
  }
  func.func @transform_0(%arg0: i32, %arg1: i32, %arg2: i32) -> (i32, i32, i32, i32) {
    %c0_i32 = arith.constant 0 : i32
    %c0_i32_0 = arith.constant 0 : i32
    %c0_i32_1 = arith.constant 0 : i32
    return %arg0, %c0_i32, %arg1, %c0_i32_0 : i32, i32, i32, i32
  }
  func.func @transform_1(%arg0: i32, %arg1: i32, %arg2: i32) -> (i32, i32, i32, i32) {
    %c0_i32 = arith.constant 0 : i32
    %c0_i32_0 = arith.constant 0 : i32
    %c0_i32_1 = arith.constant 0 : i32
    return %arg0, %c0_i32, %arg2, %c0_i32_0 : i32, i32, i32, i32
  }
  func.func @transform_2(%arg0: i32, %arg1: i32, %arg2: i32) -> (i32, i32, i32, i32) {
    %c0_i32 = arith.constant 0 : i32
    %c0_i32_0 = arith.constant 0 : i32
    %c0_i32_1 = arith.constant 0 : i32
    return %arg0, %c0_i32, %arg2, %c0_i32_0 : i32, i32, i32, i32
  }
  func.func @transform_3(%arg0: i32, %arg1: i32, %arg2: i32) -> (i32, i32, i32, i32) {
    %c0_i32 = arith.constant 0 : i32
    %c0_i32_0 = arith.constant 0 : i32
    %c0_i32_1 = arith.constant 0 : i32
    return %arg0, %c0_i32, %arg1, %c0_i32_0 : i32, i32, i32, i32
  }
}

module attributes {stable_mosaic.version = 11 : i64} {
  func.func @_linear_bias_kernel(%arg0: i32, %arg1: i32, %arg2: i32, %arg3: memref<16x32xbf16, #tpu.memory_space<vmem>>, %arg4: memref<32x32xbf16, #tpu.memory_space<vmem>>, %arg5: memref<1x32xf32, #tpu.memory_space<vmem>>, %arg6: memref<16x32xf32, #tpu.memory_space<vmem>>, %arg7: memref<16x32xf32, #tpu.memory_space<vmem>>) attributes {dimension_semantics = [#tpu.dimension_semantics<parallel>, #tpu.dimension_semantics<parallel>, #tpu.dimension_semantics<arbitrary>], iteration_bounds = array<i64: 1, 1, 1>, scalar_prefetch = 0 : i64, scratch_operands = 1 : i64, tpu.core_type = #tpu.core_type<tc>, window_params = [{transform_indices = @transform_0, window_bounds = array<i64: 16, 32>}, {transform_indices = @transform_1, window_bounds = array<i64: 32, 32>}, {transform_indices = @transform_2, window_bounds = array<i64: 1, 32>}, {transform_indices = @transform_3, window_bounds = array<i64: 16, 32>}]} {
    %c0_i32 = arith.constant 0 : i32
    %0 = arith.cmpi eq, %arg2, %c0_i32 : i32
    %1 = arith.extui %0 : i1 to i32
    %c0_i32_0 = arith.constant 0 : i32
    %2 = arith.cmpi ne, %1, %c0_i32_0 : i32
    scf.if %2 {
      %cst_10 = arith.constant 0.000000e+00 : f32
      %12 = vector.broadcast %cst_10 : f32 to vector<16x32xf32>
      %c0_11 = arith.constant 0 : index
      %c0_12 = arith.constant 0 : index
      %13 = vector.load %arg7[%c0_11, %c0_12] : memref<16x32xf32, #tpu.memory_space<vmem>>, vector<16x32xf32>
      tpu.vector_store %arg7[%c0_11, %c0_12], %12 {strides = array<i32>} : memref<16x32xf32, #tpu.memory_space<vmem>>, vector<16x32xf32>,
    } else {
    }
    %c0 = arith.constant 0 : index
    %c0_1 = arith.constant 0 : index
    %3 = vector.load %arg7[%c0, %c0_1] : memref<16x32xf32, #tpu.memory_space<vmem>>, vector<16x32xf32>
    %c0_2 = arith.constant 0 : index
    %c0_3 = arith.constant 0 : index
    %4 = vector.load %arg3[%c0_2, %c0_3] : memref<16x32xbf16, #tpu.memory_space<vmem>>, vector<16x32xbf16>
    %c0_4 = arith.constant 0 : index
    %c0_5 = arith.constant 0 : index
    %5 = vector.load %arg4[%c0_4, %c0_5] : memref<32x32xbf16, #tpu.memory_space<vmem>>, vector<32x32xbf16>
    %cst = arith.constant dense<0.000000e+00> : vector<16x32xf32>
    %6 = tpu.matmul %4, %5, %cst {dimension_numbers = #tpu.dot_dimension_numbers<[1], [0], [0], [1], [0, 0, 1, 1], [], []>} : vector<16x32xbf16>, vector<32x32xbf16>, vector<16x32xf32> -> vector<16x32xf32>
    %7 = arith.addf %3, %6 : vector<16x32xf32>
    %c0_6 = arith.constant 0 : index
    %c0_7 = arith.constant 0 : index
    %8 = vector.load %arg7[%c0_6, %c0_7] : memref<16x32xf32, #tpu.memory_space<vmem>>, vector<16x32xf32>
    tpu.vector_store %arg7[%c0_6, %c0_7], %7 {strides = array<i32>} : memref<16x32xf32, #tpu.memory_space<vmem>>, vector<16x32xf32>,
    %c0_i32_8 = arith.constant 0 : i32
    %9 = arith.cmpi eq, %arg2, %c0_i32_8 : i32
    %10 = arith.extui %9 : i1 to i32
    %c0_i32_9 = arith.constant 0 : i32
    %11 = arith.cmpi ne, %10, %c0_i32_9 : i32
    scf.if %11 {
      %c0_10 = arith.constant 0 : index
      %c0_11 = arith.constant 0 : index
      %12 = vector.load %arg7[%c0_10, %c0_11] : memref<16x32xf32, #tpu.memory_space<vmem>>, vector<16x32xf32>
      %c0_12 = arith.constant 0 : index
      %c0_13 = arith.constant 0 : index
      %13 = vector.load %arg5[%c0_12, %c0_13] : memref<1x32xf32, #tpu.memory_space<vmem>>, vector<1x32xf32>
      %14 = vector.broadcast %13 : vector<1x32xf32> to vector<16x32xf32>
      %15 = arith.addf %12, %14 : vector<16x32xf32>
      %c0_14 = arith.constant 0 : index
      %c0_15 = arith.constant 0 : index
      %16 = vector.load %arg6[%c0_14, %c0_15] : memref<16x32xf32, #tpu.memory_space<vmem>>, vector<16x32xf32>
      tpu.vector_store %arg6[%c0_14, %c0_15], %15 {strides = array<i32>} : memref<16x32xf32, #tpu.memory_space<vmem>>, vector<16x32xf32>,
    } else {
    }
    return
  }
  func.func @transform_0(%arg0: i32, %arg1: i32, %arg2: i32) -> (i32, i32) {
    %c0_i32 = arith.constant 0 : i32
    return %arg0, %arg2 : i32, i32
  }
  func.func @transform_1(%arg0: i32, %arg1: i32, %arg2: i32) -> (i32, i32) {
    %c0_i32 = arith.constant 0 : i32
    return %arg2, %arg1 : i32, i32
  }
  func.func @transform_2(%arg0: i32, %arg1: i32, %arg2: i32) -> (i32, i32) {
    %c0_i32 = arith.constant 0 : i32
    %c0_i32_0 = arith.constant 0 : i32
    return %c0_i32, %arg1 : i32, i32
  }
  func.func @transform_3(%arg0: i32, %arg1: i32, %arg2: i32) -> (i32, i32) {
    %c0_i32 = arith.constant 0 : i32
    return %arg0, %arg1 : i32, i32
  }
}

module attributes {stable_mosaic.version = 11 : i64} {
  func.func @_linear_bias_kernel(%arg0: i32, %arg1: i32, %arg2: i32, %arg3: memref<16x32xbf16, #tpu.memory_space<vmem>>, %arg4: memref<32x128xbf16, #tpu.memory_space<vmem>>, %arg5: memref<1x128xf32, #tpu.memory_space<vmem>>, %arg6: memref<16x128xbf16, #tpu.memory_space<vmem>>, %arg7: memref<16x128xf32, #tpu.memory_space<vmem>>) attributes {dimension_semantics = [#tpu.dimension_semantics<parallel>, #tpu.dimension_semantics<parallel>, #tpu.dimension_semantics<arbitrary>], iteration_bounds = array<i64: 1, 1, 1>, scalar_prefetch = 0 : i64, scratch_operands = 1 : i64, tpu.core_type = #tpu.core_type<tc>, window_params = [{transform_indices = @transform_0, window_bounds = array<i64: 16, 32>}, {transform_indices = @transform_1, window_bounds = array<i64: 32, 128>}, {transform_indices = @transform_2, window_bounds = array<i64: 1, 128>}, {transform_indices = @transform_3, window_bounds = array<i64: 16, 128>}]} {
    %c0_i32 = arith.constant 0 : i32
    %0 = arith.cmpi eq, %arg2, %c0_i32 : i32
    %1 = arith.extui %0 : i1 to i32
    %c0_i32_0 = arith.constant 0 : i32
    %2 = arith.cmpi ne, %1, %c0_i32_0 : i32
    scf.if %2 {
      %cst_10 = arith.constant 0.000000e+00 : f32
      %12 = vector.broadcast %cst_10 : f32 to vector<16x128xf32>
      %c0_11 = arith.constant 0 : index
      %c0_12 = arith.constant 0 : index
      %13 = vector.load %arg7[%c0_11, %c0_12] : memref<16x128xf32, #tpu.memory_space<vmem>>, vector<16x128xf32>
      tpu.vector_store %arg7[%c0_11, %c0_12], %12 {strides = array<i32>} : memref<16x128xf32, #tpu.memory_space<vmem>>, vector<16x128xf32>,
    } else {
    }
    %c0 = arith.constant 0 : index
    %c0_1 = arith.constant 0 : index
    %3 = vector.load %arg7[%c0, %c0_1] : memref<16x128xf32, #tpu.memory_space<vmem>>, vector<16x128xf32>
    %c0_2 = arith.constant 0 : index
    %c0_3 = arith.constant 0 : index
    %4 = vector.load %arg3[%c0_2, %c0_3] : memref<16x32xbf16, #tpu.memory_space<vmem>>, vector<16x32xbf16>
    %c0_4 = arith.constant 0 : index
    %c0_5 = arith.constant 0 : index
    %5 = vector.load %arg4[%c0_4, %c0_5] : memref<32x128xbf16, #tpu.memory_space<vmem>>, vector<32x128xbf16>
    %cst = arith.constant dense<0.000000e+00> : vector<16x128xf32>
    %6 = tpu.matmul %4, %5, %cst {dimension_numbers = #tpu.dot_dimension_numbers<[1], [0], [0], [1], [0, 0, 1, 1], [], []>} : vector<16x32xbf16>, vector<32x128xbf16>, vector<16x128xf32> -> vector<16x128xf32>
    %7 = arith.addf %3, %6 : vector<16x128xf32>
    %c0_6 = arith.constant 0 : index
    %c0_7 = arith.constant 0 : index
    %8 = vector.load %arg7[%c0_6, %c0_7] : memref<16x128xf32, #tpu.memory_space<vmem>>, vector<16x128xf32>
    tpu.vector_store %arg7[%c0_6, %c0_7], %7 {strides = array<i32>} : memref<16x128xf32, #tpu.memory_space<vmem>>, vector<16x128xf32>,
    %c0_i32_8 = arith.constant 0 : i32
    %9 = arith.cmpi eq, %arg2, %c0_i32_8 : i32
    %10 = arith.extui %9 : i1 to i32
    %c0_i32_9 = arith.constant 0 : i32
    %11 = arith.cmpi ne, %10, %c0_i32_9 : i32
    scf.if %11 {
      %c0_10 = arith.constant 0 : index
      %c0_11 = arith.constant 0 : index
      %12 = vector.load %arg7[%c0_10, %c0_11] : memref<16x128xf32, #tpu.memory_space<vmem>>, vector<16x128xf32>
      %c0_12 = arith.constant 0 : index
      %c0_13 = arith.constant 0 : index
      %13 = vector.load %arg5[%c0_12, %c0_13] : memref<1x128xf32, #tpu.memory_space<vmem>>, vector<1x128xf32>
      %14 = vector.broadcast %13 : vector<1x128xf32> to vector<16x128xf32>
      %15 = arith.addf %12, %14 : vector<16x128xf32>
      %cst_14 = arith.constant 5.000000e-01 : f32
      %16 = vector.broadcast %cst_14 : f32 to vector<16x128xf32>
      %17 = arith.mulf %16, %15 : vector<16x128xf32>
      %cst_15 = arith.constant 4.471500e-02 : f32
      %18 = vector.broadcast %cst_15 : f32 to vector<16x128xf32>
      %19 = arith.mulf %18, %15 : vector<16x128xf32>
      %20 = arith.mulf %19, %15 : vector<16x128xf32>
      %21 = arith.mulf %20, %15 : vector<16x128xf32>
      %22 = arith.addf %15, %21 : vector<16x128xf32>
      %cst_16 = arith.constant 0.797884583 : f32
      %23 = vector.broadcast %cst_16 : f32 to vector<16x128xf32>
      %24 = arith.mulf %23, %22 : vector<16x128xf32>
      %25 = math.tanh %24 : vector<16x128xf32>
      %cst_17 = arith.constant 1.000000e+00 : f32
      %26 = vector.broadcast %cst_17 : f32 to vector<16x128xf32>
      %27 = arith.addf %26, %25 : vector<16x128xf32>
      %28 = arith.mulf %17, %27 : vector<16x128xf32>
      %29 = arith.truncf %28 : vector<16x128xf32> to vector<16x128xbf16>
      %c0_18 = arith.constant 0 : index
      %c0_19 = arith.constant 0 : index
      %30 = vector.load %arg6[%c0_18, %c0_19] : memref<16x128xbf16, #tpu.memory_space<vmem>>, vector<16x128xbf16>
      tpu.vector_store %arg6[%c0_18, %c0_19], %29 {strides = array<i32>} : memref<16x128xbf16, #tpu.memory_space<vmem>>, vector<16x128xbf16>,
    } else {
    }
    return
  }
  func.func @transform_0(%arg0: i32, %arg1: i32, %arg2: i32) -> (i32, i32) {
    %c0_i32 = arith.constant 0 : i32
    return %arg0, %arg2 : i32, i32
  }
  func.func @transform_1(%arg0: i32, %arg1: i32, %arg2: i32) -> (i32, i32) {
    %c0_i32 = arith.constant 0 : i32
    return %arg2, %arg1 : i32, i32
  }
  func.func @transform_2(%arg0: i32, %arg1: i32, %arg2: i32) -> (i32, i32) {
    %c0_i32 = arith.constant 0 : i32
    %c0_i32_0 = arith.constant 0 : i32
    return %c0_i32, %arg1 : i32, i32
  }
  func.func @transform_3(%arg0: i32, %arg1: i32, %arg2: i32) -> (i32, i32) {
    %c0_i32 = arith.constant 0 : i32
    return %arg0, %arg1 : i32, i32
  }
}

module attributes {stable_mosaic.version = 11 : i64} {
  func.func @_linear_nobias_kernel(%arg0: i32, %arg1: i32, %arg2: i32, %arg3: memref<16x32xbf16, #tpu.memory_space<vmem>>, %arg4: memref<32x64xbf16, #tpu.memory_space<vmem>>, %arg5: memref<16x64xf32, #tpu.memory_space<vmem>>, %arg6: memref<16x64xf32, #tpu.memory_space<vmem>>) attributes {dimension_semantics = [#tpu.dimension_semantics<parallel>, #tpu.dimension_semantics<parallel>, #tpu.dimension_semantics<arbitrary>], iteration_bounds = array<i64: 1, 1, 1>, scalar_prefetch = 0 : i64, scratch_operands = 1 : i64, tpu.core_type = #tpu.core_type<tc>, window_params = [{transform_indices = @transform_0, window_bounds = array<i64: 16, 32>}, {transform_indices = @transform_1, window_bounds = array<i64: 32, 64>}, {transform_indices = @transform_2, window_bounds = array<i64: 16, 64>}]} {
    %c0_i32 = arith.constant 0 : i32
    %0 = arith.cmpi eq, %arg2, %c0_i32 : i32
    %1 = arith.extui %0 : i1 to i32
    %c0_i32_0 = arith.constant 0 : i32
    %2 = arith.cmpi ne, %1, %c0_i32_0 : i32
    scf.if %2 {
      %cst_10 = arith.constant 0.000000e+00 : f32
      %12 = vector.broadcast %cst_10 : f32 to vector<16x64xf32>
      %c0_11 = arith.constant 0 : index
      %c0_12 = arith.constant 0 : index
      %13 = vector.load %arg6[%c0_11, %c0_12] : memref<16x64xf32, #tpu.memory_space<vmem>>, vector<16x64xf32>
      tpu.vector_store %arg6[%c0_11, %c0_12], %12 {strides = array<i32>} : memref<16x64xf32, #tpu.memory_space<vmem>>, vector<16x64xf32>,
    } else {
    }
    %c0 = arith.constant 0 : index
    %c0_1 = arith.constant 0 : index
    %3 = vector.load %arg6[%c0, %c0_1] : memref<16x64xf32, #tpu.memory_space<vmem>>, vector<16x64xf32>
    %c0_2 = arith.constant 0 : index
    %c0_3 = arith.constant 0 : index
    %4 = vector.load %arg3[%c0_2, %c0_3] : memref<16x32xbf16, #tpu.memory_space<vmem>>, vector<16x32xbf16>
    %c0_4 = arith.constant 0 : index
    %c0_5 = arith.constant 0 : index
    %5 = vector.load %arg4[%c0_4, %c0_5] : memref<32x64xbf16, #tpu.memory_space<vmem>>, vector<32x64xbf16>
    %cst = arith.constant dense<0.000000e+00> : vector<16x64xf32>
    %6 = tpu.matmul %4, %5, %cst {dimension_numbers = #tpu.dot_dimension_numbers<[1], [0], [0], [1], [0, 0, 1, 1], [], []>} : vector<16x32xbf16>, vector<32x64xbf16>, vector<16x64xf32> -> vector<16x64xf32>
    %7 = arith.addf %3, %6 : vector<16x64xf32>
    %c0_6 = arith.constant 0 : index
    %c0_7 = arith.constant 0 : index
    %8 = vector.load %arg6[%c0_6, %c0_7] : memref<16x64xf32, #tpu.memory_space<vmem>>, vector<16x64xf32>
    tpu.vector_store %arg6[%c0_6, %c0_7], %7 {strides = array<i32>} : memref<16x64xf32, #tpu.memory_space<vmem>>, vector<16x64xf32>,
    %c0_i32_8 = arith.constant 0 : i32
    %9 = arith.cmpi eq, %arg2, %c0_i32_8 : i32
    %10 = arith.extui %9 : i1 to i32
    %c0_i32_9 = arith.constant 0 : i32
    %11 = arith.cmpi ne, %10, %c0_i32_9 : i32
    scf.if %11 {
      %c0_10 = arith.constant 0 : index
      %c0_11 = arith.constant 0 : index
      %12 = vector.load %arg6[%c0_10, %c0_11] : memref<16x64xf32, #tpu.memory_space<vmem>>, vector<16x64xf32>
      %c0_12 = arith.constant 0 : index
      %c0_13 = arith.constant 0 : index
      %13 = vector.load %arg5[%c0_12, %c0_13] : memref<16x64xf32, #tpu.memory_space<vmem>>, vector<16x64xf32>
      tpu.vector_store %arg5[%c0_12, %c0_13], %12 {strides = array<i32>} : memref<16x64xf32, #tpu.memory_space<vmem>>, vector<16x64xf32>,
    } else {
    }
    return
  }
  func.func @transform_0(%arg0: i32, %arg1: i32, %arg2: i32) -> (i32, i32) {
    %c0_i32 = arith.constant 0 : i32
    return %arg0, %arg2 : i32, i32
  }
  func.func @transform_1(%arg0: i32, %arg1: i32, %arg2: i32) -> (i32, i32) {
    %c0_i32 = arith.constant 0 : i32
    return %arg2, %arg1 : i32, i32
  }
  func.func @transform_2(%arg0: i32, %arg1: i32, %arg2: i32) -> (i32, i32) {
    %c0_i32 = arith.constant 0 : i32
    return %arg0, %arg1 : i32, i32
  }
}

module attributes {stable_mosaic.version = 11 : i64} {
  func.func @_linear_bias_kernel(%arg0: i32, %arg1: i32, %arg2: i32, %arg3: memref<16x128xbf16, #tpu.memory_space<vmem>>, %arg4: memref<128x32xbf16, #tpu.memory_space<vmem>>, %arg5: memref<1x32xf32, #tpu.memory_space<vmem>>, %arg6: memref<16x32xf32, #tpu.memory_space<vmem>>, %arg7: memref<16x32xf32, #tpu.memory_space<vmem>>) attributes {dimension_semantics = [#tpu.dimension_semantics<parallel>, #tpu.dimension_semantics<parallel>, #tpu.dimension_semantics<arbitrary>], iteration_bounds = array<i64: 1, 1, 1>, scalar_prefetch = 0 : i64, scratch_operands = 1 : i64, tpu.core_type = #tpu.core_type<tc>, window_params = [{transform_indices = @transform_0, window_bounds = array<i64: 16, 128>}, {transform_indices = @transform_1, window_bounds = array<i64: 128, 32>}, {transform_indices = @transform_2, window_bounds = array<i64: 1, 32>}, {transform_indices = @transform_3, window_bounds = array<i64: 16, 32>}]} {
    %c0_i32 = arith.constant 0 : i32
    %0 = arith.cmpi eq, %arg2, %c0_i32 : i32
    %1 = arith.extui %0 : i1 to i32
    %c0_i32_0 = arith.constant 0 : i32
    %2 = arith.cmpi ne, %1, %c0_i32_0 : i32
    scf.if %2 {
      %cst_10 = arith.constant 0.000000e+00 : f32
      %12 = vector.broadcast %cst_10 : f32 to vector<16x32xf32>
      %c0_11 = arith.constant 0 : index
      %c0_12 = arith.constant 0 : index
      %13 = vector.load %arg7[%c0_11, %c0_12] : memref<16x32xf32, #tpu.memory_space<vmem>>, vector<16x32xf32>
      tpu.vector_store %arg7[%c0_11, %c0_12], %12 {strides = array<i32>} : memref<16x32xf32, #tpu.memory_space<vmem>>, vector<16x32xf32>,
    } else {
    }
    %c0 = arith.constant 0 : index
    %c0_1 = arith.constant 0 : index
    %3 = vector.load %arg7[%c0, %c0_1] : memref<16x32xf32, #tpu.memory_space<vmem>>, vector<16x32xf32>
    %c0_2 = arith.constant 0 : index
    %c0_3 = arith.constant 0 : index
    %4 = vector.load %arg3[%c0_2, %c0_3] : memref<16x128xbf16, #tpu.memory_space<vmem>>, vector<16x128xbf16>
    %c0_4 = arith.constant 0 : index
    %c0_5 = arith.constant 0 : index
    %5 = vector.load %arg4[%c0_4, %c0_5] : memref<128x32xbf16, #tpu.memory_space<vmem>>, vector<128x32xbf16>
    %cst = arith.constant dense<0.000000e+00> : vector<16x32xf32>
    %6 = tpu.matmul %4, %5, %cst {dimension_numbers = #tpu.dot_dimension_numbers<[1], [0], [0], [1], [0, 0, 1, 1], [], []>} : vector<16x128xbf16>, vector<128x32xbf16>, vector<16x32xf32> -> vector<16x32xf32>
    %7 = arith.addf %3, %6 : vector<16x32xf32>
    %c0_6 = arith.constant 0 : index
    %c0_7 = arith.constant 0 : index
    %8 = vector.load %arg7[%c0_6, %c0_7] : memref<16x32xf32, #tpu.memory_space<vmem>>, vector<16x32xf32>
    tpu.vector_store %arg7[%c0_6, %c0_7], %7 {strides = array<i32>} : memref<16x32xf32, #tpu.memory_space<vmem>>, vector<16x32xf32>,
    %c0_i32_8 = arith.constant 0 : i32
    %9 = arith.cmpi eq, %arg2, %c0_i32_8 : i32
    %10 = arith.extui %9 : i1 to i32
    %c0_i32_9 = arith.constant 0 : i32
    %11 = arith.cmpi ne, %10, %c0_i32_9 : i32
    scf.if %11 {
      %c0_10 = arith.constant 0 : index
      %c0_11 = arith.constant 0 : index
      %12 = vector.load %arg7[%c0_10, %c0_11] : memref<16x32xf32, #tpu.memory_space<vmem>>, vector<16x32xf32>
      %c0_12 = arith.constant 0 : index
      %c0_13 = arith.constant 0 : index
      %13 = vector.load %arg5[%c0_12, %c0_13] : memref<1x32xf32, #tpu.memory_space<vmem>>, vector<1x32xf32>
      %14 = vector.broadcast %13 : vector<1x32xf32> to vector<16x32xf32>
      %15 = arith.addf %12, %14 : vector<16x32xf32>
      %c0_14 = arith.constant 0 : index
      %c0_15 = arith.constant 0 : index
      %16 = vector.load %arg6[%c0_14, %c0_15] : memref<16x32xf32, #tpu.memory_space<vmem>>, vector<16x32xf32>
      tpu.vector_store %arg6[%c0_14, %c0_15], %15 {strides = array<i32>} : memref<16x32xf32, #tpu.memory_space<vmem>>, vector<16x32xf32>,
    } else {
    }
    return
  }
  func.func @transform_0(%arg0: i32, %arg1: i32, %arg2: i32) -> (i32, i32) {
    %c0_i32 = arith.constant 0 : i32
    return %arg0, %arg2 : i32, i32
  }
  func.func @transform_1(%arg0: i32, %arg1: i32, %arg2: i32) -> (i32, i32) {
    %c0_i32 = arith.constant 0 : i32
    return %arg2, %arg1 : i32, i32
  }
  func.func @transform_2(%arg0: i32, %arg1: i32, %arg2: i32) -> (i32, i32) {
    %c0_i32 = arith.constant 0 : i32
    %c0_i32_0 = arith.constant 0 : i32
    return %c0_i32, %arg1 : i32, i32
  }
  func.func @transform_3(%arg0: i32, %arg1: i32, %arg2: i32) -> (i32, i32) {
    %c0_i32 = arith.constant 0 : i32
    return %arg0, %arg1 : i32, i32
  }
}

</mosaic_0001>

<bundles_post_ra>
// kernel: gpt_forward.16
= control target key start
LH: loop header
LB: loop body
LE: loop exit
PB: predicated region body
PF: predicated region fallthrough
CT: control target
= control target key end

     0   :  { %vm16_vm0 = vcmask 261120   ;;  %vm70_vm1 = vcmask 257024   ;;  %s129_s0 = inlined_call_operand.vmem [shape: f32[16,32], index: 0, kind: input, shape index: {}]   ;;  %s130_s1 = inlined_call_operand.vmem [shape: f32[1,32], index: 1, kind: input, shape index: {}]   ;;  %s131_s2 = inlined_call_operand.vmem [shape: f32[1,32], index: 2, kind: input, shape index: {}]   ;;  %s132_s3 = inlined_call_operand.vmem [shape: bf16[16,32], index: 3, kind: output, shape index: {}]  }
   0x1   :  { %v14_v0 = vld [vmem:[%s129_s0] sm:$0xff]  ;;  %v15_v1 = vld [vmem:[%s129_s0 + $0x8] sm:$0xff] }
   0x2   :  { %v17_v2 = vsel %vm16_vm0, %v14_v0, 0.0  ;;  %v20_v3 = vsel %vm16_vm0, %v15_v1, 0.0  ;;  %v77_v21 = vld [vmem:[%s130_s1] ss:$0 sm:$0xff] }
   0x3   :  { %18 = vadd.xlane.f32.xlu0 %v17_v2  ;;  %v78_v23 = vld [vmem:[%s131_s2] ss:$0 sm:$0xff] }
   0x7   :  { %21 = vadd.xlane.f32.xlu0 %v20_v3 }
  0x8c   :  { %v19_v4 = vpop.xlane.xlu0 %18 }
  0x8d   :  { %v24_v5 = vmul.f32 0.03125, %v19_v4 }
  0x8f   :  { %v26_v6 = vsub.f32 %v14_v0, %v24_v5 }
  0x90   :  { %v22_v7 = vpop.xlane.xlu0 %21 }
  0x91   :  { %v25_v8 = vmul.f32 0.03125, %v22_v7  ;;  %v28_v9 = vmul.f32 %v26_v6, %v26_v6 }
  0x93   :  { %v27_v10 = vsub.f32 %v15_v1, %v25_v8  ;;  %v30_v11 = vsel %vm16_vm0, %v28_v9, 0.0 }
  0x94   :  { %31 = vadd.xlane.f32.xlu1 %v30_v11 }
  0x95   :  { %v29_v12 = vmul.f32 %v27_v10, %v27_v10 }
  0x97   :  { %v33_v13 = vsel %vm16_vm0, %v29_v12, 0.0 }
  0x98   :  { %34 = vadd.xlane.f32.xlu1 %v33_v13 }
 0x11d   :  { %v32_v14 = vpop.xlane.xlu1 %31 }
 0x11e   :  { %v36_v15 = vmul.f32 0.03125, %v32_v14 }
 0x120   :  { %v38_v16 = vadd.f32 1e-05, %v36_v15 }
 0x121   :  { %v35_v17 = vpop.xlane.xlu1 %34 }
 0x122   :  { %83 = vrsqrt.f32 %v38_v16  ;;  %v37_v18 = vmul.f32 0.03125, %v35_v17 }
 0x124   :  { %v39_v19 = vadd.f32 1e-05, %v37_v18 }
 0x126   :  { %85 = vrsqrt.f32 %v39_v19 }
 0x12f   :  { %v84_v20 = vpop.eup %83 }
 0x130   :  { %v42_v22 = vmul.f32 %v84_v20, %v26_v6 }
 0x132   :  { %v51_v24 = vmul.f32 %v77_v21, %v42_v22 }
 0x133   :  { %v86_v25 = vpop.eup %85 }
 0x134   :  { %v60_v26 = vadd.f32 %v78_v23, %v51_v24  ;;  %v43_v27 = vmul.f32 %v86_v25, %v27_v10 }
 0x136   :  { %v81_v28 = vpack.c.bf16 %v60_v26, %v60_v26  ;;  %v52_v29 = vmul.f32 %v77_v21, %v43_v27 }
 0x138   :  { %71 = vst.msk [vmem:[%s132_s3] sm:$0xf] %vm70_vm1, %v81_v28  ;;  %v61_v30 = vadd.f32 %v78_v23, %v52_v29 }
 0x13a   :  { %v82_v31 = vpack.c.bf16 %v61_v30, %v61_v30 }
 0x13c   :  { %72 = vst.msk [vmem:[%s132_s3 + $0x4] sm:$0xf] %vm70_vm1, %v82_v31 }

// kernel: gpt_forward.19
= control target key start
LH: loop header
LB: loop body
LE: loop exit
PB: predicated region body
PF: predicated region fallthrough
CT: control target
= control target key end

     0   :  { %vm19_vm0 = vcmask 261120   ;;  %v137_v0 = vmov 0.0   ;;  %vm138_vm1 = vmmov 0   ;;  %s184_s1 = inlined_call_operand.vmem [shape: bf16[32,32], index: 1, kind: input, shape index: {}]   ;;  %s185_s0 = inlined_call_operand.vmem [shape: bf16[16,32], index: 0, kind: input, shape index: {}]   ;;  %s186_s2 = inlined_call_operand.vmem [shape: f32[1,32], index: 2, kind: input, shape index: {}]   ;;  %s187_s3 = inlined_call_operand.vmem [shape: f32[16,32], index: 3, kind: output, shape index: {}]  }
   0x1   :  { %124 = vmatprep.subr.bf16.mxu0 %v137_v0  ;;  %v134_v1 = vld [vmem:[%s184_s1 + $0x8] sm:$0xff]   ;;  %128 = vmatprep.mubr.msk.bf16.mxu0 %vm138_vm1, %v137_v0  ;;  %20 = vst.msk [vmem:[#allocation2] sm:$0xff] %vm19_vm0, %v137_v0  ;;  %21 = vst.msk [vmem:[#allocation2 + $0x8] sm:$0xff] %vm19_vm0, %v137_v0  ;;  %v135_v2 = vld [vmem:[%s184_s1] sm:$0xff]  }
   0x2   :  { %125 = vmatpush3.bf16.msra.mxu0 %v134_v1  ;;  %v136_v3 = vld [vmem:[%s185_s0] sm:$0xff]  }
   0x3   :  { %126 = vmatprep.subr.bf16.mxu0 %v137_v0  ;;  %v120_v12 = vld [vmem:[%s186_s2] ss:$0 sm:$0xff] }
   0x6   :  { %127 = vmatpush3.bf16.msra.mxu0 %v135_v2 }
   0x8   :  { %v22_v4 = vld [vmem:[#allocation2] sm:$0xff]  ;;  %v23_v8 = vld [vmem:[#allocation2 + $0x8] sm:$0xff] }
   0x9   :  { %129 = vmatmul.mubr.msk.bf16.vlgmr.msra.gmra.mxu0 %vm19_vm0, %v136_v3 }
  0xc9   :  { %v85_v5 = vpop.f32.mrf.mxu0 }
  0xca   :  { %v92_v6 = vadd.f32 %v85_v5, %v22_v4 }
  0xcb   :  { %v130_v7 = vpop.f32.mrf.mxu0 }
  0xcc   :  { %94 = vst.msk [vmem:[#allocation2] sm:$0xff] %vm19_vm0, %v92_v6 }
  0xcd   :  { %v88_v9 = vpop.f32.mrf.mxu0 }
  0xce   :  { %v93_v10 = vadd.f32 %v88_v9, %v23_v8 }
  0xcf   :  { %v131_v11 = vpop.f32.mrf.mxu0 }
  0xd0   :  { %95 = vst.msk [vmem:[#allocation2 + $0x8] sm:$0xff] %vm19_vm0, %v93_v10 }
  0xd3   :  { %v99_v13 = vld [vmem:[#allocation2] sm:$0xff] }
  0xd4   :  { %v108_v14 = vadd.f32 %v120_v12, %v99_v13 }
  0xd6   :  { %110 = vst.msk [vmem:[%s187_s3] sm:$0xff] %vm19_vm0, %v108_v14 }
  0xd7   :  { %v100_v15 = vld [vmem:[#allocation2 + $0x8] sm:$0xff] }
  0xd8   :  { %v109_v16 = vadd.f32 %v120_v12, %v100_v15 }
  0xda   :  { %111 = vst.msk [vmem:[%s187_s3 + $0x8] sm:$0xff] %vm19_vm0, %v109_v16 }

// kernel: gpt_forward.17
= control target key start
LH: loop header
LB: loop body
LE: loop exit
PB: predicated region body
PF: predicated region fallthrough
CT: control target
= control target key end

     0   :  { %vm19_vm0 = vcmask 785408   ;;  %v151_v0 = vmov 0.0   ;;  %vm152_vm1 = vmmov 0   ;;  %vm47_vm2 = vcmask 261120   ;;  %s195_s1 = inlined_call_operand.vmem [shape: bf16[32,96], index: 1, kind: input, shape index: {}]   ;;  %s196_s0 = inlined_call_operand.vmem [shape: bf16[16,32], index: 0, kind: input, shape index: {}]   ;;  %s197_s2 = inlined_call_operand.vmem [shape: f32[1,96], index: 2, kind: input, shape index: {}]   ;;  %s198_s3 = inlined_call_operand.vmem [shape: bf16[16,96], index: 3, kind: output, shape index: {}]  }
   0x1   :  { %138 = vmatprep.subr.bf16.mxu0 %v151_v0  ;;  %v148_v1 = vld [vmem:[%s195_s1 + $0x8] sm:$0xff]   ;;  %142 = vmatprep.mubr.msk.bf16.mxu0 %vm152_vm1, %v151_v0  ;;  %20 = vst.msk [vmem:[#allocation2] sm:$0xff] %vm19_vm0, %v151_v0  ;;  %21 = vst.msk [vmem:[#allocation2 + $0x8] sm:$0xff] %vm19_vm0, %v151_v0  ;;  %v149_v2 = vld [vmem:[%s195_s1] sm:$0xff]   ;;  %vm119_vm3 = vcmask 781312  }
   0x2   :  { %139 = vmatpush3.bf16.msra.mxu0 %v148_v1  ;;  %v150_v3 = vld [vmem:[%s196_s0] sm:$0xff]  }
   0x3   :  { %140 = vmatprep.subr.bf16.mxu0 %v151_v0  ;;  %v130_v12 = vld [vmem:[%s197_s2] ss:$0 sm:$0xff] }
   0x6   :  { %141 = vmatpush3.bf16.msra.mxu0 %v149_v2 }
   0x8   :  { %v22_v4 = vld [vmem:[#allocation2] sm:$0xff]  ;;  %v23_v8 = vld [vmem:[#allocation2 + $0x8] sm:$0xff] }
   0x9   :  { %143 = vmatmul.mubr.msk.bf16.vlgmr.msra.gmra.mxu0 %vm47_vm2, %v150_v3 }
  0xc9   :  { %v85_v5 = vpop.f32.mrf.mxu0 }
  0xca   :  { %v92_v6 = vadd.f32 %v85_v5, %v22_v4 }
  0xcb   :  { %v144_v7 = vpop.f32.mrf.mxu0 }
  0xcc   :  { %95 = vst.msk [vmem:[#allocation2] sm:$0xff] %vm19_vm0, %v92_v6 }
  0xcd   :  { %v88_v9 = vpop.f32.mrf.mxu0 }
  0xce   :  { %v93_v10 = vadd.f32 %v88_v9, %v23_v8 }
  0xcf   :  { %v145_v11 = vpop.f32.mrf.mxu0 }
  0xd0   :  { %96 = vst.msk [vmem:[#allocation2 + $0x8] sm:$0xff] %vm19_vm0, %v93_v10 }
  0xd3   :  { %v100_v13 = vld [vmem:[#allocation2] sm:$0xff] }
  0xd4   :  { %v109_v14 = vadd.f32 %v130_v12, %v100_v13 }
  0xd6   :  { %v133_v15 = vpack.c.bf16 %v109_v14, %v109_v14 }
  0xd7   :  { %v101_v16 = vld [vmem:[#allocation2 + $0x8] sm:$0xff] }
  0xd8   :  { %120 = vst.msk [vmem:[%s198_s3] sm:$0xf] %vm119_vm3, %v133_v15  ;;  %v110_v17 = vadd.f32 %v130_v12, %v101_v16 }
  0xda   :  { %v134_v18 = vpack.c.bf16 %v110_v17, %v110_v17 }
  0xdc   :  { %121 = vst.msk [vmem:[%s198_s3 + $0x4] sm:$0xf] %vm119_vm3, %v134_v18 }

// kernel: gpt_forward.18
= control target key start
LH: loop header
LB: loop body
LE: loop exit
PB: predicated region body
PF: predicated region fallthrough
CT: control target
= control target key end

     0   :  { %s861_s12 = smov 0   ;;  %s863_s13 = smov 0   ;;  %s932_s0 = inlined_call_operand.vmem [shape: bf16[2,2,8,16], index: 0, kind: input, shape index: {}]   ;;  %s933_s1 = inlined_call_operand.vmem [shape: bf16[2,2,8,16], index: 1, kind: input, shape index: {}]   ;;  %s934_s2 = inlined_call_operand.vmem [shape: bf16[2,2,8,16], index: 2, kind: input, shape index: {}]   ;;  %s935_s3 = inlined_call_operand.vmem [shape: bf16[2,2,8,16], index: 3, kind: output, shape index: {}]  }
   0x1   :  { %s865_s14 = smov 0  }
   0x2 LB: > { %s32_s15 = sadd.s32 1, %s831_s13  ;;  %p720_p0 = scmp.ge.s32.totalorder %s835_s14, 1  ;;  %s835_s14 = sphi %s865_s14, %s13_s14   ;;  %s831_s13 = sphi %s863_s13, %s937_s13   ;;  %s827_s12 = sphi %s861_s12, %s936_s12  }
   0x3   : > { %p34_p1 = scmp.ge.s32.totalorder %s32_s15, 2  ;;  %p193_p2 = scmp.lt.s32.totalorder %s835_s14, 3 }
   0x5   : > { %s939_s15 = smov (%p34_p1, %s32_s15), 0  ;;  %p194_p3 = pnand %p720_p0, %p193_p2 }
   0x6   : > { %p239_p4 = scmp.lt.s32.totalorder (!%p194_p3), %s827_s12, 1 }
   0x7   : > { %197 = sbr.rel (%p194_p3) target bundleno = 799 (0x31f), region = 32 }
   0xc   : > { %vm281_vm0 = vcmask 130048   ;;  %v837_v0 = vmov 0.0   ;;  %s941_s12 = smov (!%p239_p4, %s827_s12), 1  ;;  %vm838_vm1 = vmmov 0   ;;  %vm276_vm2 = vcmask 7168  }
   0xd   : > { %747 = vmatprep.subr.bf16.mxu0 %v837_v0  ;;  %753 = vmatprep.subr.bf16.mxu1 %v837_v0  ;;  %282 = vst.msk [vmem:[#allocation4] sm:$0xff] %vm281_vm0, %v837_v0  ;;  %283 = vst.msk [vmem:[#allocation4 + $0x8] sm:$0xff] %vm281_vm0, %v837_v0  ;;  %s883_s16 = sshll.u32 %s941_s12, 3  ;;  %v839_v7 = vmov -1e+30   ;;  %v392_v8 = vlaneseq  ;;  %vm407_vm4 = vcmask 64512  }
   0xe   : > { %749 = vmatprep.mubr.msk.bf16.mxu0 %vm838_vm1, %v837_v0  ;;  %755 = vmatprep.mubr.msk.bf16.mxu1 %vm838_vm1, %v837_v0  ;;  %s254_s19 = scalar_lea.vmem %s933_s1, %s883_s16  ;;  %s246_s22 = scalar_lea.vmem %s932_s0, %s883_s16  ;;  %277 = vst.msk [vmem:[#allocation2] sm:$0xff] %vm276_vm2, %v839_v7  ;;  %278 = vst.msk [vmem:[#allocation2 + $0x8] sm:$0xff] %vm276_vm2, %v839_v7  ;;  %v840_v25 = vmov 0   ;;  %vm472_vm5 = vcmask 1043456   ;;  %vm591_vm6 = vcmask 125952  }
   0xf   : > { %v293_v1 = vld [vmem:[%s254_s19] sm:$0xf]  ;;  %v294_v2 = vld [vmem:[%s254_s19 + $0x4] sm:$0xf]  ;;  %279 = vst.msk [vmem:[#allocation3] sm:$0xff] %vm276_vm2, %v837_v0  ;;  %280 = vst.msk [vmem:[#allocation3 + $0x8] sm:$0xff] %vm276_vm2, %v837_v0  ;;  %799 = vset.pattern.permute.xlu1 %v840_v25  ;;  %800 = vset.pattern.permute.xlu0 %v840_v25  ;;  %s262_s25 = scalar_lea.vmem %s934_s2, %s883_s16  ;;  %s270_s28 = scalar_lea.vmem %s935_s3, %s883_s16 }
  0x10   : > { %v302_v3 = vsel %vm281_vm0, %v293_v1, 0  ;;  %v348_v4 = vsel %vm281_vm0, %v294_v2, 0  ;;  %v291_v5 = vld [vmem:[%s246_s22] sm:$0xf]  ;;  %v292_v6 = vld [vmem:[%s246_s22 + $0x4] sm:$0xf] }
  0x11   : > { %748 = vmatpush3.bf16.xpose.msra.mxu0 %v302_v3  ;;  %754 = vmatpush3.bf16.xpose.msra.mxu1 %v348_v4  ;;  %v393_v9 = vshrl.u32 %v392_v8, 7  ;;  %v397_v10 = vand.u32 127, %v392_v8  ;;  %v295_v34 = vld [vmem:[%s262_s25] sm:$0xf]  ;;  %v296_v36 = vld [vmem:[%s262_s25 + $0x4] sm:$0xf] }
  0x12   : > { %759 = vmatprep.subr.bf16.mxu0 %v837_v0  ;;  %765 = vmatprep.subr.bf16.mxu1 %v837_v0  ;;  %v474_v35 = vsel %vm472_vm5, %v295_v34, 0  ;;  %v520_v37 = vsel %vm472_vm5, %v296_v36, 0 }
  0x13   : > { %vm400_vm3 = vcmp.le.s32.totalorder %v397_v10, %v393_v9 }
  0x14   : > { %v453_v2 = vld [vmem:[#allocation4] sm:$0xff] }
  0x15   : > { %v405_v26 = vld [vmem:[#allocation2] sm:$0xff]  ;;  %v406_v29 = vld [vmem:[#allocation2 + $0x8] sm:$0xff] }
  0x16   : > { %v438_v54 = vld [vmem:[#allocation3] sm:$0xff]  ;;  %v439_v57 = vld [vmem:[#allocation3 + $0x8] sm:$0xff] }
  0x18   : > { %750 = vmatmul.mubr.msk.bf16.vlgmr.msra.gmra.mxu0 %vm281_vm0, %v291_v5  ;;  %756 = vmatmul.mubr.msk.bf16.vlgmr.msra.gmra.mxu1 %vm281_vm0, %v292_v6  ;;  %v454_v5 = vld [vmem:[#allocation4 + $0x8] sm:$0xff] }
  0x19   : > { %761 = vmatprep.mubr.msk.bf16.mxu0 %vm838_vm1, %v837_v0  ;;  %767 = vmatprep.mubr.msk.bf16.mxu1 %vm838_vm1, %v837_v0 }
  0x1a   : > { %760 = vmatpush3.bf16.msra.mxu0 %v474_v35  ;;  %766 = vmatpush3.bf16.msra.mxu1 %v520_v37 }
  0xd8   : > { %v338_v11 = vpop.f32.mrf.mxu0  ;;  %v384_v12 = vpop.f32.mrf.mxu1 }
  0xd9   : > { %v390_v13 = vmul.f32 0.25, %v338_v11  ;;  %v391_v14 = vmul.f32 0.25, %v384_v12 }
  0xda   : > { %v751_v15 = vpop.f32.mrf.mxu0  ;;  %v757_v16 = vpop.f32.mrf.mxu1 }
  0xdb   : > { %v403_v17 = vsel %vm400_vm3, %v390_v13, -1e+30  ;;  %v404_v18 = vsel %vm400_vm3, %v391_v14, -1e+30 }
  0xdc   : > { %v341_v19 = vpop.f32.mrf.mxu0  ;;  %v387_v20 = vpop.f32.mrf.mxu1  ;;  %v408_v21 = vsel %vm407_vm4, %v403_v17, -inf  ;;  %v411_v24 = vsel %vm407_vm4, %v404_v18, -inf }
  0xdd   : > { %409 = vmax.xlane.f32.xlu0 %v408_v21 }
  0xde   : > { %v752_v22 = vpop.f32.mrf.mxu0  ;;  %v758_v23 = vpop.f32.mrf.mxu1 }
  0xe1   : > { %412 = vmax.xlane.f32.xlu0 %v411_v24 }
 0x166   : > { %v410_v27 = vpop.xlane.xlu0 %409 }
 0x167   : > { %v414_v28 = vmax.f32 %v405_v26, %v410_v27 }
 0x169   : > { %v416_v30 = vsub.f32 %v405_v26, %v414_v28  ;;  %566 = vst.msk [vmem:[#allocation2] sm:$0xff] %vm276_vm2, %v414_v28  ;;  %424 = vperm.xlu1 %799, %v414_v28  }
 0x16a   : > { %v413_v31 = vpop.xlane.xlu0 %412 }
 0x16b   : > { %v415_v32 = vmax.f32 %v406_v29, %v413_v31  ;;  %v418_v51 = vmul.f32 1.442695, %v416_v30 }
 0x16d   : > { %v417_v33 = vsub.f32 %v406_v29, %v415_v32  ;;  %567 = vst.msk [vmem:[#allocation2 + $0x8] sm:$0xff] %vm276_vm2, %v415_v32  ;;  %429 = vperm.xlu1 %799, %v415_v32  }
 0x16f   : > { %v420_v48 = vmul.f32 1.442695, %v417_v33 }
 0x1e4   : > { %v425_v38 = vpop.permute.xlu1 %424 }
 0x1e5   : > { %v432_v39 = vsub.f32 %v403_v17, %v425_v38 }
 0x1e7   : > { %v434_v40 = vmul.f32 1.442695, %v432_v39 }
 0x1e8   : > { %v430_v41 = vpop.permute.xlu1 %429 }
 0x1e9   : > { %801 = vpow2.f32 %v434_v40  ;;  %v433_v42 = vsub.f32 %v404_v18, %v430_v41 }
 0x1eb   : > { %v436_v43 = vmul.f32 1.442695, %v433_v42 }
 0x1ed   : > { %803 = vpow2.f32 %v436_v43 }
 0x1ee   : > { %805 = vpow2.f32 %v420_v48 }
 0x1ef   : > { %807 = vpow2.f32 %v418_v51 }
 0x1f6   : > { %v802_v44 = vpop.eup %801 }
 0x1f7   : > { %v442_v45 = vsel %vm407_vm4, %v802_v44, 0.0  ;;  %v467_v46 = vpack.c.bf16 %v802_v44, %v802_v44 }
 0x1f8   : > { %443 = vadd.xlane.f32.xlu0 %v442_v45 }
 0x1f9   : > { %762 = vmatmul.mubr.msk.bf16.vlgmr.msra.gmra.mxu0 %vm407_vm4, %v467_v46 }
 0x1fa   : > { %v804_v47 = vpop.eup %803 }
 0x1fb   : > { %v445_v49 = vsel %vm407_vm4, %v804_v47, 0.0  ;;  %v468_v50 = vpack.c.bf16 %v804_v47, %v804_v47  ;;  %v806_v52 = vpop.eup %805 }
 0x1fc   : > { %446 = vadd.xlane.f32.xlu1 %v445_v49  ;;  %v808_v53 = vpop.eup %807  ;;  %v441_v59 = vmul.f32 %v806_v52, %v439_v57 }
 0x1fd   : > { %768 = vmatmul.mubr.msk.bf16.vlgmr.msra.gmra.mxu1 %vm407_vm4, %v468_v50  ;;  %v440_v55 = vmul.f32 %v808_v53, %v438_v54 }
 0x20d   : > { %462 = vperm.xlu1 %799, %v806_v52  }
 0x20e   : > { %457 = vperm.xlu0 %800, %v808_v53  }
 0x281   : > { %v444_v56 = vpop.xlane.xlu0 %443 }
 0x282   : > { %v448_v58 = vadd.f32 %v444_v56, %v440_v55 }
 0x284   : > { %451 = vst.msk [vmem:[#allocation3] sm:$0xff] %vm276_vm2, %v448_v58 }
 0x285   : > { %v447_v60 = vpop.xlane.xlu1 %446 }
 0x286   : > { %v449_v61 = vadd.f32 %v447_v60, %v441_v59 }
 0x288   : > { %452 = vst.msk [vmem:[#allocation3 + $0x8] sm:$0xff] %vm276_vm2, %v449_v61 }
 0x289   : > { %v458_v3 = vpop.permute.xlu0 %457  ;;  %v463_v6 = vpop.permute.xlu1 %462 }
 0x28a   : > { %v465_v4 = vmul.f32 %v458_v3, %v453_v2  ;;  %v466_v10 = vmul.f32 %v463_v6, %v454_v5 }
 0x28b   : > { %v571_v62 = vld [vmem:[#allocation3] sm:$0xff] }
 0x28c   : > { %809 = vrcp.f32 %v571_v62 }
 0x28f   : > { %v572_v63 = vld [vmem:[#allocation3 + $0x8] sm:$0xff] }
 0x290   : > { %811 = vrcp.f32 %v572_v63 }
 0x299   : > { %v810_v0 = vpop.eup %809 }
 0x29a   : > { %579 = vperm.xlu0 %800, %v810_v0  }
 0x29d   : > { %v812_v1 = vpop.eup %811 }
 0x29e   : > { %584 = vperm.xlu0 %800, %v812_v1  }
 0x2b9   : > { %v510_v7 = vpop.f32.mrf.mxu0 }
 0x2ba   : > { %v562_v8 = vadd.f32 %v510_v7, %v465_v4 }
 0x2bb   : > { %v763_v9 = vpop.f32.mrf.mxu0 }
 0x2bc   : > { %564 = vst.msk [vmem:[#allocation4] sm:$0xff] %vm281_vm0, %v562_v8 }
 0x2bd   : > { %v513_v11 = vpop.f32.mrf.mxu0  ;;  %v556_v12 = vpop.f32.mrf.mxu1 }
 0x2be   : > { %v563_v13 = vadd.f32 %v556_v12, %v466_v10 }
 0x2bf   : > { %v764_v14 = vpop.f32.mrf.mxu0  ;;  %v769_v15 = vpop.f32.mrf.mxu1 }
 0x2c0   : > { %565 = vst.msk [vmem:[#allocation4 + $0x8] sm:$0xff] %vm281_vm0, %v563_v13 }
 0x2c1   : > { %v559_v16 = vpop.f32.mrf.mxu1 }
 0x2c3   : > { %v770_v17 = vpop.f32.mrf.mxu1  ;;  %v575_v19 = vld [vmem:[#allocation4] sm:$0xff] }
 0x2c7   : > { %v576_v22 = vld [vmem:[#allocation4 + $0x8] sm:$0xff] }
 0x315   : > { %v580_v18 = vpop.permute.xlu0 %579 }
 0x316   : > { %v587_v20 = vmul.f32 %v580_v18, %v575_v19 }
 0x318   : > { %v589_v21 = vpack.c.bf16 %v587_v20, %v587_v20 }
 0x319   : > { %v585_v23 = vpop.permute.xlu0 %584 }
 0x31a   : > { %592 = vst.msk [vmem:[%s270_s28] sm:$0xf] %vm591_vm6, %v589_v21  ;;  %v588_v24 = vmul.f32 %v585_v23, %v576_v22 }
 0x31c   : > { %v590_v25 = vpack.c.bf16 %v588_v24, %v588_v24 }
 0x31e   : > { %593 = vst.msk [vmem:[%s270_s28 + $0x4] sm:$0xf] %vm591_vm6, %v590_v25 }
 0x31f PF: > { %s13_s14 = sadd.s32 1, %s835_s14   ;;  %s936_s12 = smov %s831_s13 }
 0x320   : > { %p10_p5 = scmp.ge.s32.totalorder %s13_s14, 4   ;;  %s937_s13 = smov %s939_s15 }
 0x322   :  { %12 = sbr.rel (!%p10_p5) target bundleno = 2 (0x2), region = 80 }

// kernel: gpt_forward.21
= control target key start
LH: loop header
LB: loop body
LE: loop exit
PB: predicated region body
PF: predicated region fallthrough
CT: control target
= control target key end

     0   :  { %v175_v0 = vmov 0.0   ;;  %vm176_vm0 = vmmov 0   ;;  %vm46_vm1 = vcmask 261120   ;;  %s212_s1 = inlined_call_operand.vmem [shape: bf16[32,128], index: 1, kind: input, shape index: {}]   ;;  %s213_s0 = inlined_call_operand.vmem [shape: bf16[16,32], index: 0, kind: input, shape index: {}]   ;;  %s214_s2 = inlined_call_operand.vmem [shape: f32[1,128], index: 2, kind: input, shape index: {}]   ;;  %s215_s3 = inlined_call_operand.vmem [shape: bf16[16,128], index: 3, kind: output, shape index: {}]  }
   0x1   :  { %158 = vmatprep.subr.bf16.mxu0 %v175_v0  ;;  %v168_v1 = vld [vmem:[%s212_s1 + $0x8] sm:$0xff]   ;;  %162 = vmatprep.mubr.msk.bf16.mxu0 %vm176_vm0, %v175_v0  ;;  %v169_v2 = vld [vmem:[%s212_s1] sm:$0xff]  }
   0x2   :  { %159 = vmatpush3.bf16.msra.mxu0 %v168_v1  ;;  %v170_v3 = vld [vmem:[%s213_s0] sm:$0xff]  }
   0x3   :  { %160 = vmatprep.subr.bf16.mxu0 %v175_v0  ;;  %v145_v4 = vld [vmem:[%s214_s2] ss:$0 sm:$0xff] }
   0x6   :  { %161 = vmatpush3.bf16.msra.mxu0 %v169_v2 }
   0x9   :  { %163 = vmatmul.mubr.msk.bf16.vlgmr.msra.gmra.mxu0 %vm46_vm1, %v170_v3 }
  0xc9   :  { %v84_v5 = vpop.f32.mrf.mxu0 }
  0xca   :  { %v107_v6 = vadd.f32 %v145_v4, %v84_v5 }
  0xcb   :  { %v164_v7 = vpop.f32.mrf.mxu0 }
  0xcc   :  { %v111_v8 = vmul.f32 0.044715, %v107_v6  ;;  %v109_v24 = vmul.f32 0.5, %v107_v6 }
  0xcd   :  { %v87_v9 = vpop.f32.mrf.mxu0 }
  0xce   :  { %v113_v10 = vmul.f32 %v111_v8, %v107_v6  ;;  %v108_v11 = vadd.f32 %v145_v4, %v87_v9 }
  0xcf   :  { %v165_v12 = vpop.f32.mrf.mxu0 }
  0xd0   :  { %v115_v13 = vmul.f32 %v113_v10, %v107_v6  ;;  %v112_v14 = vmul.f32 0.044715, %v108_v11  ;;  %v110_v25 = vmul.f32 0.5, %v108_v11 }
  0xd2   :  { %v117_v15 = vadd.f32 %v115_v13, %v107_v6  ;;  %v114_v16 = vmul.f32 %v112_v14, %v108_v11 }
  0xd4   :  { %v119_v17 = vmul.f32 0.7978846, %v117_v15  ;;  %v116_v18 = vmul.f32 %v114_v16, %v108_v11 }
  0xd6   :  { %171 = vtanh.f32 %v119_v17  ;;  %v118_v19 = vadd.f32 %v116_v18, %v108_v11 }
  0xd8   :  { %v120_v20 = vmul.f32 0.7978846, %v118_v19 }
  0xda   :  { %173 = vtanh.f32 %v120_v20 }
  0xe3   :  { %v172_v21 = vpop.eup %171 }
  0xe4   :  { %v123_v22 = vadd.f32 1.0, %v172_v21 }
  0xe6   :  { %v125_v27 = vmul.f32 %v123_v22, %v109_v24 }
  0xe7   :  { %v174_v23 = vpop.eup %173 }
  0xe8   :  { %v124_v26 = vadd.f32 1.0, %v174_v23 }
  0xea   :  { %v126_v28 = vmul.f32 %v124_v26, %v110_v25 }
  0xec   :  { %v153_v29 = vpack.c.bf16 %v126_v28, %v125_v27 }
  0xee   :  { %154 = vst [vmem:[%s215_s3] sm:$0xff] %v153_v29  }

// kernel: gpt_forward.31
= control target key start
LH: loop header
LB: loop body
LE: loop exit
PB: predicated region body
PF: predicated region fallthrough
CT: control target
= control target key end

     0   :  { %v163_v1 = vmov 0.0   ;;  %vm164_vm0 = vmmov 0   ;;  %vm17_vm1 = vcmask 523264   ;;  %s201_s0 = inlined_call_operand.vmem [shape: bf16[16,32], index: 0, kind: input, shape index: {}]   ;;  %s202_s1 = inlined_call_operand.vmem [shape: bf16[32,64], index: 1, kind: input, shape index: {}]   ;;  %s203_s2 = inlined_call_operand.hbm [shape: f32[16,64], index: 2, kind: output, shape index: {}]  }
   0x1   :  { %v138_v0 = vld [vmem:[%s202_s1 + $0x8] sm:$0xff]   ;;  %125 = vmatprep.subr.bf16.mxu0 %v163_v1  ;;  %v139_v2 = vld [vmem:[%s202_s1] sm:$0xff]   ;;  %129 = vmatprep.mubr.msk.bf16.mxu0 %vm164_vm0, %v163_v1 }
   0x2   :  { %126 = vmatpush3.bf16.msra.mxu0 %v138_v0 }
   0x3   :  { %127 = vmatprep.subr.bf16.mxu0 %v163_v1 }
   0x4   :  { %7 = vsyncpa [#allocation4], 0  ;;  %18 = vst.msk [vmem:[#allocation2] sm:$0xff] %vm17_vm1, %v163_v1  ;;  %v140_v3 = vld [vmem:[%s201_s0] sm:$0xff]   ;;  %vm45_vm2 = vcmask 261120   ;;  %s165_s1 = smov [#allocation3]  }
   0x5   :  { %19 = vst.msk [vmem:[#allocation2 + $0x8] sm:$0xff] %vm17_vm1, %v163_v1  ;;  %s107_s15 = sshll.u32 %s165_s1, 4  ;;  %s108_s15 = int_to_ptr.vmem [resolvable:$true] %s107_s15 }
   0x6   :  { %128 = vmatpush3.bf16.msra.mxu0 %v139_v2  ;;  %s141_s0 = scalar_lea.vmem %s108_s15, 256  ;;  %p146_p1 = scmp.lt.s32.totalorder %s108_s15, %s108_s15 }
   0x7   :  { %p142_p0 = scmp.ne.s32.totalorder %s108_s15, %s141_s0  ;;  %p147_p2 = scmp.lt.s32.totalorder %s141_s0, %s141_s0 }
   0x9   :  { %130 = vmatmul.mubr.msk.bf16.vlgmr.msra.gmra.mxu0 %vm45_vm2, %v140_v3  ;;  %p148_p3 = por %p147_p2, %p146_p1 }
   0xb   :  { %v20_v4 = vld [vmem:[#allocation2] sm:$0xff]  ;;  %p149_p4 = pnand %p148_p3, %p142_p0 }
   0xc   :  { %v21_v8 = vld [vmem:[#allocation2 + $0x8] sm:$0xff] }
  0xc9   :  { %v83_v5 = vpop.f32.mrf.mxu0 }
  0xca   :  { %v90_v6 = vadd.f32 %v83_v5, %v20_v4 }
  0xcb   :  { %v131_v7 = vpop.f32.mrf.mxu0 }
  0xcc   :  { %93 = vst.msk [vmem:[#allocation2] sm:$0xff] %vm17_vm1, %v90_v6 }
  0xcd   :  { %v86_v9 = vpop.f32.mrf.mxu0 }
  0xce   :  { %v91_v10 = vadd.f32 %v86_v9, %v21_v8 }
  0xcf   :  { %v132_v11 = vpop.f32.mrf.mxu0 }
  0xd0   :  { %94 = vst.msk [vmem:[#allocation2 + $0x8] sm:$0xff] %vm17_vm1, %v91_v10 }
  0xd3   :  { %v98_v12 = vld [vmem:[#allocation2] sm:$0xff] }
  0xd4   :  { %100 = vst.msk [vmem:[#allocation3] sm:$0xff] %vm17_vm1, %v98_v12 }
  0xd7   :  { %v99_v13 = vld [vmem:[#allocation2 + $0x8] sm:$0xff] }
  0xd8   :  { %101 = vst.msk [vmem:[#allocation3 + $0x8] sm:$0xff] %vm17_vm1, %v99_v13 }
  0xd9   :  { %152 = shalt.err (!%p149_p4)
}
  0xda   :  { %s166_s16 = smov 128   ;;  %s167_s17 = smov 8  }
  0xdb   :  { %113 = dma.vmem_to_hbm [thread:$0]  %s108_s15, 256, %s203_s2, [#allocation4], %s166_s16, %s166_s16, %s167_s17  }
  0xdc   :  { %161 = dma.done.wait [#allocation4], 256  }
  0xdd   :  { %162 = vsyncadd [#allocation4], 4294967040 }
  0xde   :  { %117 = vsyncpa [#allocation4], 1 }

// kernel: gpt_forward.22
= control target key start
LH: loop header
LB: loop body
LE: loop exit
PB: predicated region body
PF: predicated region fallthrough
CT: control target
= control target key end

     0   :  { %vm19_vm0 = vcmask 261120   ;;  %v212_v0 = vmov 0.0   ;;  %vm213_vm1 = vmmov 0   ;;  %s276_s1 = inlined_call_operand.vmem [shape: bf16[128,32], index: 1, kind: input, shape index: {}]   ;;  %s277_s0 = inlined_call_operand.vmem [shape: bf16[16,128], index: 0, kind: input, shape index: {}]   ;;  %s278_s2 = inlined_call_operand.vmem [shape: f32[1,32], index: 2, kind: input, shape index: {}]   ;;  %s279_s3 = inlined_call_operand.vmem [shape: f32[16,32], index: 3, kind: output, shape index: {}]  }
   0x1   :  { %181 = vmatprep.subr.bf16.mxu0 %v212_v0  ;;  %v203_v1 = vld [vmem:[%s276_s1 + $0x38] sm:$0xff]   ;;  %197 = vmatprep.mubr.msk.bf16.mxu0 %vm213_vm1, %v212_v0  ;;  %20 = vst.msk [vmem:[#allocation2] sm:$0xff] %vm19_vm0, %v212_v0  ;;  %21 = vst.msk [vmem:[#allocation2 + $0x8] sm:$0xff] %vm19_vm0, %v212_v0  ;;  %v204_v2 = vld [vmem:[%s276_s1 + $0x30] sm:$0xff]  }
   0x2   :  { %182 = vmatpush3.bf16.msra.mxu0 %v203_v1  ;;  %v205_v3 = vld [vmem:[%s276_s1 + $0x28] sm:$0xff]   ;;  %v206_v4 = vld [vmem:[%s276_s1 + $0x20] sm:$0xff]   ;;  %v207_v5 = vld [vmem:[%s276_s1 + $0x18] sm:$0xff]  }
   0x3   :  { %183 = vmatprep.subr.bf16.mxu0 %v212_v0  ;;  %v208_v6 = vld [vmem:[%s276_s1 + $0x10] sm:$0xff]   ;;  %v209_v7 = vld [vmem:[%s276_s1 + $0x8] sm:$0xff]   ;;  %v210_v8 = vld [vmem:[%s276_s1] sm:$0xff]  }
   0x4   :  { %v211_v9 = vld [vmem:[%s277_s0] sm:$0xff]  }
   0x5   :  { %v171_v18 = vld [vmem:[%s278_s2] ss:$0 sm:$0xff] }
   0x6   :  { %184 = vmatpush3.bf16.msra.mxu0 %v204_v2 }
   0x7   :  { %185 = vmatprep.subr.bf16.mxu0 %v212_v0 }
   0x8   :  { %v22_v10 = vld [vmem:[#allocation2] sm:$0xff]  ;;  %v23_v14 = vld [vmem:[#allocation2 + $0x8] sm:$0xff] }
   0xa   :  { %186 = vmatpush3.bf16.msra.mxu0 %v205_v3 }
   0xb   :  { %187 = vmatprep.subr.bf16.mxu0 %v212_v0 }
   0xe   :  { %188 = vmatpush3.bf16.msra.mxu0 %v206_v4 }
   0xf   :  { %189 = vmatprep.subr.bf16.mxu0 %v212_v0 }
  0x12   :  { %190 = vmatpush3.bf16.msra.mxu0 %v207_v5 }
  0x13   :  { %191 = vmatprep.subr.bf16.mxu0 %v212_v0 }
  0x16   :  { %192 = vmatpush3.bf16.msra.mxu0 %v208_v6 }
  0x17   :  { %193 = vmatprep.subr.bf16.mxu0 %v212_v0 }
  0x1a   :  { %194 = vmatpush3.bf16.msra.mxu0 %v209_v7 }
  0x1b   :  { %195 = vmatprep.subr.bf16.mxu0 %v212_v0 }
  0x1e   :  { %196 = vmatpush3.bf16.msra.mxu0 %v210_v8 }
  0x21   :  { %198 = vmatmul.mubr.bf16.vlgmr.msra.gmra.mxu0 %v211_v9 }
  0xe1   :  { %v130_v11 = vpop.f32.mrf.mxu0 }
  0xe2   :  { %v137_v12 = vadd.f32 %v130_v11, %v22_v10 }
  0xe3   :  { %v199_v13 = vpop.f32.mrf.mxu0 }
  0xe4   :  { %140 = vst.msk [vmem:[#allocation2] sm:$0xff] %vm19_vm0, %v137_v12 }
  0xe5   :  { %v133_v15 = vpop.f32.mrf.mxu0 }
  0xe6   :  { %v138_v16 = vadd.f32 %v133_v15, %v23_v14 }
  0xe7   :  { %v200_v17 = vpop.f32.mrf.mxu0 }
  0xe8   :  { %141 = vst.msk [vmem:[#allocation2 + $0x8] sm:$0xff] %vm19_vm0, %v138_v16 }
  0xeb   :  { %v145_v19 = vld [vmem:[#allocation2] sm:$0xff] }
  0xec   :  { %v154_v20 = vadd.f32 %v171_v18, %v145_v19 }
  0xee   :  { %156 = vst.msk [vmem:[%s279_s3] sm:$0xff] %vm19_vm0, %v154_v20 }
  0xef   :  { %v146_v21 = vld [vmem:[#allocation2 + $0x8] sm:$0xff] }
  0xf0   :  { %v155_v22 = vadd.f32 %v171_v18, %v146_v21 }
  0xf2   :  { %157 = vst.msk [vmem:[%s279_s3 + $0x8] sm:$0xff] %vm19_vm0, %v155_v22 }

</bundles_post_ra>
